<compile_context>
chip_gen: v7x
topology: tpu7x:2x2x1
jax: 0.10.0
libtpu: 0.0.40
codegen_flags: <defaults>
</compile_context>

<pallas_src>
import numpy as np
import jax
import jax.numpy as jnp
from jax.experimental import pallas as pl
from jax.experimental.pallas import tpu as pltpu  # noqa: F401  (TPU backend)

# ---- hyper-parameters (small, consistent with the module) ------------------
B = 2          # batch
S = 8          # sequence length
IN = 16        # hp.input_size
D = 32         # hp.hidden_size
H = 4          # hp.nhead
DH = D // H    # head dim
F = 64         # hp.dim_feedforward
OUT = 8        # hp.output_size
OUT_PAD = 128  # lane-dense padded output width
L = 2          # hp.num_layers
MAXLEN = 16    # hp.max_position_embeddings
EPS = 1e-5     # LayerNorm eps (torch default)
BS = B * S     # 16
HS = H * S     # 32
BHS = B * HS   # 64
QKV_PAD = 3 * 128   # padded qkv width (q @ lane 0, k @ 128, v @ 256)

# per-layer bias / LayerNorm slab: one vector per sublane row, lane offset 0
VEC_ROWS = 16
_VROW = {"bq": 0, "bk": 1, "bv": 2, "bo": 3, "ln1g": 4, "ln1b": 5,
         "b1": 6, "b2": 7, "ln2g": 8, "ln2b": 9}
_VWID = {"bq": D, "bk": D, "bv": D, "bo": D, "ln1g": D, "ln1b": D,
         "b1": F, "b2": D, "ln2g": D, "ln2b": D}


def _ln_fast(y, g, b):
    # var = E[y^2] - mu^2 : sum(y) and sum(y^2) are independent reductions
    mu = jnp.mean(y, axis=-1, keepdims=True)
    ms = jnp.mean(y * y, axis=-1, keepdims=True)
    inv = jax.lax.rsqrt(jnp.maximum(ms - mu * mu, 0.0) + EPS)
    return (y - mu) * inv * g + b


# ---------------------------- fused Pallas kernel ----------------------------
def fused_forward_kernel(x_ref, encw_ref, encbpe_ref, wqkv_ref, wo_ref, w1_ref,
                         w2_ref, vecs_ref, decw_ref, decb_ref,
                         hmask_ref, bmask_ref, bones_ref, o_ref):
    f32 = jnp.float32
    bf16 = jnp.bfloat16

    hmask = hmask_ref[...]        # (BHS, D)   f32 : per-head column mask
    bmask = bmask_ref[...]        # (BS, BHS)  f32 : same-batch column mask
    bones = bones_ref[...]        # (BHS, BHS) bf16: same-head block-ones

    # encoder linear; encbpe already holds (encoder bias + positional encoding)
    y = jnp.dot(x_ref[...].astype(bf16), encw_ref[...],
                preferred_element_type=f32) + encbpe_ref[...]        # (BS, D)

    for li in range(L):                                              # static unroll
        wqkv = wqkv_ref[li]       # (D, 384) bf16, Q cols pre-scaled by 1/sqrt(DH)
        wo = wo_ref[li]           # (D, D)   bf16
        w1 = w1_ref[li]           # (D, F)   bf16
        w2 = w2_ref[li]           # (F, D)   bf16
        vec = vecs_ref[li]        # (16, 128) f32

        def row(name, _vec=vec):
            r = _VROW[name]
            return _vec[r:r + 1, :_VWID[name]]

        qkv = jnp.dot(y.astype(bf16), wqkv, preferred_element_type=f32)  # (BS, 384)
        q = qkv[:, 0:D] + row("bq")                 # 128-aligned lane slices
        k = qkv[:, 128:128 + D] + row("bk")
        v = qkv[:, 256:256 + D] + row("bv")

        # replicate each batch's K/V block H times along sublanes, mask per head
        k_rep = jnp.concatenate([k[b * S:(b + 1) * S] for b in range(B)
                                 for _ in range(H)], axis=0)          # (BHS, D)
        v_rep = jnp.concatenate([v[b * S:(b + 1) * S] for b in range(B)
                                 for _ in range(H)], axis=0)
        kbd = (k_rep * hmask).astype(bf16)
        vbd = (v_rep * hmask).astype(bf16)

        # all batches & heads in one score matmul (1/sqrt(DH) folded into Wq/bq)
        s = jnp.einsum("qd,kd->qk", q.astype(bf16), kbd,
                       preferred_element_type=f32)                    # (BS, BHS)
        s = s - jnp.max(s, axis=-1, keepdims=True)    # global row shift: valid
        e = jnp.exp(s) * bmask                        # zero cross-batch columns
        # per-(batch,head) denominators; bones spans both batches per head, so
        # denom > 0 everywhere and cross-batch p is exactly 0 (no 0/0 NaNs).
        denom = jnp.dot(e.astype(bf16), bones, preferred_element_type=f32)
        p = e * pl.reciprocal(denom, approx=True)
        ctx = jnp.dot(p.astype(bf16), vbd, preferred_element_type=f32)    # (BS, D)
        attn = jnp.dot(ctx.astype(bf16), wo, preferred_element_type=f32) + row("bo")

        y = _ln_fast(y + attn, row("ln1g"), row("ln1b"))      # norm1(x + sa(x))

        hdn = jnp.maximum(jnp.dot(y.astype(bf16), w1, preferred_element_type=f32)
                          + row("b1"), 0.0)                   # relu
        ff = jnp.dot(hdn.astype(bf16), w2, preferred_element_type=f32) + row("b2")
        y = _ln_fast(y + ff, row("ln2g"), row("ln2b"))        # norm2(y + ff(y))

    # decoder, padded to 128 lanes for an unmasked lane-dense store
    o_ref[...] = jnp.dot(y.astype(bf16), decw_ref[...],
                         preferred_element_type=f32) + decb_ref[...]


# ---------------------------- wrapper ----------------------------------------
def model_forward(x, prep):
    x_flat = x.reshape(BS, IN)
    out = pl.pallas_call(
        fused_forward_kernel,
        out_shape=jax.ShapeDtypeStruct((BS, OUT_PAD), jnp.float32),
        # no grid: kernel invoked once, all operands staged whole into VMEM
    )(x_flat, prep["enc_w"], prep["enc_bpe"], prep["wqkv"], prep["wo"],
      prep["w1"], prep["w2"], prep["vecs"], prep["dec_w"], prep["dec_b"],
      prep["head_mask"], prep["batch_mask"], prep["block_ones"])
    return out[:, :OUT].reshape(B, S, OUT)


# ------------------- one-time parameter preparation (host) -------------------
def prepare_params(params, pe_slice):
    scale = jnp.float32(1.0 / np.sqrt(DH))
    bf16 = jnp.bfloat16

    # fold encoder bias + positional encoding (indexed by batch!) into one slab
    enc_bpe = jnp.broadcast_to(params["enc_b"][None] + pe_slice,
                               (B, S, D)).reshape(BS, D)

    wqkv_all, wo_all, w1_all, w2_all, vecs_all = [], [], [], [], []
    for lp in params["layers"]:
        wq = lp["wqkv"][:, 0:D] * scale          # fold 1/sqrt(DH) into Q proj
        wk = lp["wqkv"][:, D:2 * D]
        wv = lp["wqkv"][:, 2 * D:3 * D]
        wqkv_pad = (jnp.zeros((D, QKV_PAD), jnp.float32)
                    .at[:, 0:D].set(wq)
                    .at[:, 128:128 + D].set(wk)
                    .at[:, 256:256 + D].set(wv))
        wqkv_all.append(wqkv_pad.astype(bf16))
        wo_all.append(lp["wo"].astype(bf16))
        w1_all.append(lp["w1"].astype(bf16))
        w2_all.append(lp["w2"].astype(bf16))

        def put(vec, name, val):
            return vec.at[_VROW[name], :_VWID[name]].set(val.reshape(-1))

        vec = jnp.zeros((VEC_ROWS, 128), jnp.float32)
        vec = put(vec, "bq", lp["bqkv"][:, 0:D] * scale)
        vec = put(vec, "bk", lp["bqkv"][:, D:2 * D])
        vec = put(vec, "bv", lp["bqkv"][:, 2 * D:3 * D])
        vec = put(vec, "bo", lp["bo"])
        vec = put(vec, "ln1g", lp["ln1g"])
        vec = put(vec, "ln1b", lp["ln1b"])
        vec = put(vec, "b1", lp["b1"])
        vec = put(vec, "b2", lp["b2"])
        vec = put(vec, "ln2g", lp["ln2g"])
        vec = put(vec, "ln2b", lp["ln2b"])
        vecs_all.append(vec)

    dec_w_pad = (jnp.zeros((D, OUT_PAD), jnp.float32)
                 .at[:, :OUT].set(params["dec_w"]).astype(bf16))
    dec_b_pad = jnp.zeros((1, OUT_PAD), jnp.float32).at[:, :OUT].set(params["dec_b"])

    # attention masks precomputed on host (no iota rebuild inside the kernel)
    r = np.arange(BHS)
    head_of = (r % HS) // S                      # head index of extended-key col
    batch_of = r // HS                           # batch index of extended-key col
    d = np.arange(D)
    head_mask = (head_of[:, None] == (d[None, :] // DH)).astype(np.float32)   # (BHS, D)
    i = np.arange(BS)
    batch_mask = ((i // S)[:, None] == batch_of[None, :]).astype(np.float32)  # (BS, BHS)
    block_ones = (head_of[:, None] == head_of[None, :]).astype(np.float32)    # (BHS, BHS)

    return {
        "enc_w": params["enc_w"].astype(bf16),
        "enc_bpe": enc_bpe,                    # (BS, D)     f32
        "wqkv": jnp.stack(wqkv_all),           # (L, D, 384) bf16
        "wo": jnp.stack(wo_all),               # (L, D, D)   bf16
        "w1": jnp.stack(w1_all),               # (L, D, F)   bf16
        "w2": jnp.stack(w2_all),               # (L, F, D)   bf16
        "vecs": jnp.stack(vecs_all),           # (L, 16, 128) f32
        "dec_w": dec_w_pad,                    # (D, 128)    bf16
        "dec_b": dec_b_pad,                    # (1, 128)    f32
        "head_mask": jnp.asarray(head_mask),   # (BHS, D)    f32
        "batch_mask": jnp.asarray(batch_mask), # (BS, BHS)   f32
        "block_ones": jnp.asarray(block_ones, dtype=bf16),  # (BHS, BHS)
    }


# ---------------------------- pure-JAX reference -----------------------------
def _ln_ref(y, g, b):
    mu = jnp.mean(y, axis=-1, keepdims=True)
    var = jnp.mean((y - mu) ** 2, axis=-1, keepdims=True)
    return (y - mu) * jax.lax.rsqrt(var + EPS) * g + b


def reference(x, params, pe_slice):
    y = x @ params["enc_w"] + params["enc_b"]
    y = y + pe_slice                                         # (B,1,D) broadcast
    for lp in params["layers"]:
        qkv = y @ lp["wqkv"] + lp["bqkv"]
        q, k, v = jnp.split(qkv, 3, axis=-1)
        q = q.reshape(B, S, H, DH)
        k = k.reshape(B, S, H, DH)
        v = v.reshape(B, S, H, DH)
        s = jnp.einsum("bqhd,bkhd->bhqk", q, k) / np.sqrt(DH)
        p = jax.nn.softmax(s, axis=-1)
        a = jnp.einsum("bhqk,bkhd->bqhd", p, v).reshape(B, S, D)
        a = a @ lp["wo"] + lp["bo"]
        y = _ln_ref(y + a, lp["ln1g"], lp["ln1b"])
        hdn = jnp.maximum(y @ lp["w1"] + lp["b1"], 0.0)
        ff = hdn @ lp["w2"] + lp["b2"]
        y = _ln_ref(y + ff, lp["ln2g"], lp["ln2b"])
    return y @ params["dec_w"] + params["dec_b"]


# ---------------------------- parameters / inputs ----------------------------
def make_positional_encoding():
    position = np.arange(MAXLEN, dtype=np.float32)[:, None]
    div_term = np.exp(np.arange(0, D, 2, dtype=np.float32) * (-np.log(10000.0) / D))
    pe = np.zeros((MAXLEN, 1, D), dtype=np.float32)
    pe[:, 0, 0::2] = np.sin(position * div_term)
    pe[:, 0, 1::2] = np.cos(position * div_term)
    return jnp.asarray(pe)


def make_params(key):
    def nrm(k, shape, scale=0.05):
        return scale * jax.random.normal(k, shape, jnp.float32)

    keys = jax.random.split(key, 4 + L)
    params = {
        "enc_w": nrm(keys[0], (IN, D)),
        "enc_b": nrm(keys[1], (1, D)),
        "dec_w": nrm(keys[2], (D, OUT)),
        "dec_b": nrm(keys[3], (1, OUT)),
        "layers": [],
    }
    for li in range(L):
        lk = jax.random.split(keys[4 + li], 8)
        params["layers"].append({
            "wqkv": nrm(lk[0], (D, 3 * D)),
            "bqkv": nrm(lk[1], (1, 3 * D)),
            "wo": nrm(lk[2], (D, D)),
            "bo": nrm(lk[3], (1, D)),
            "ln1g": jnp.ones((1, D), jnp.float32),
            "ln1b": jnp.zeros((1, D), jnp.float32),
            "w1": nrm(lk[4], (D, F)),
            "b1": nrm(lk[5], (1, F)),
            "w2": nrm(lk[6], (F, D)),
            "b2": nrm(lk[7], (1, D)),
            "ln2g": jnp.ones((1, D), jnp.float32),
            "ln2b": jnp.zeros((1, D), jnp.float32),
        })
    return params


if __name__ == "__main__":
    key = jax.random.PRNGKey(0)
    k_params, k_x = jax.random.split(key)

    params = make_params(k_params)
    pe = make_positional_encoding()
    pe_slice = pe[:B]                 # (B, 1, D) — pe[:x.size(0)] with batch_first x

    x = jax.random.normal(k_x, (B, S, IN), jnp.float32)

    prep = prepare_params(params, pe_slice)
    forward = jax.jit(model_forward)

    out = forward(x, prep)
    out = jax.block_until_ready(out)
    assert out.shape == (B, S, OUT) and out.dtype == jnp.float32

    ref = reference(x, params, pe_slice)
    np.testing.assert_allclose(np.asarray(out), np.asarray(ref), rtol=2e-2, atol=2e-2)

    print("KERNEL_OK")
</pallas_src>

<mosaic_0001>
module attributes {stable_mosaic.version = 11 : i64} {
  func.func @fused_forward_kernel(%arg0: memref<16x16xf32, #tpu.memory_space<vmem>>, %arg1: memref<16x32xbf16, #tpu.memory_space<vmem>>, %arg2: memref<16x32xf32, #tpu.memory_space<vmem>>, %arg3: memref<2x32x384xbf16, #tpu.memory_space<vmem>>, %arg4: memref<2x32x32xbf16, #tpu.memory_space<vmem>>, %arg5: memref<2x32x64xbf16, #tpu.memory_space<vmem>>, %arg6: memref<2x64x32xbf16, #tpu.memory_space<vmem>>, %arg7: memref<2x16x128xf32, #tpu.memory_space<vmem>>, %arg8: memref<32x128xbf16, #tpu.memory_space<vmem>>, %arg9: memref<1x128xf32, #tpu.memory_space<vmem>>, %arg10: memref<64x32xf32, #tpu.memory_space<vmem>>, %arg11: memref<16x64xf32, #tpu.memory_space<vmem>>, %arg12: memref<64x64xbf16, #tpu.memory_space<vmem>>, %arg13: memref<16x128xf32, #tpu.memory_space<vmem>>) attributes {dimension_semantics = [], scalar_prefetch = 0 : i64, scratch_operands = 0 : i64, tpu.core_type = #tpu.core_type<tc>} {
    %c0 = arith.constant 0 : index
    %c0_0 = arith.constant 0 : index
    %0 = vector.load %arg10[%c0, %c0_0] : memref<64x32xf32, #tpu.memory_space<vmem>>, vector<64x32xf32>
    %c0_1 = arith.constant 0 : index
    %c0_2 = arith.constant 0 : index
    %1 = vector.load %arg11[%c0_1, %c0_2] : memref<16x64xf32, #tpu.memory_space<vmem>>, vector<16x64xf32>
    %c0_3 = arith.constant 0 : index
    %c0_4 = arith.constant 0 : index
    %2 = vector.load %arg12[%c0_3, %c0_4] : memref<64x64xbf16, #tpu.memory_space<vmem>>, vector<64x64xbf16>
    %c0_5 = arith.constant 0 : index
    %c0_6 = arith.constant 0 : index
    %3 = vector.load %arg0[%c0_5, %c0_6] : memref<16x16xf32, #tpu.memory_space<vmem>>, vector<16x16xf32>
    %4 = arith.truncf %3 : vector<16x16xf32> to vector<16x16xbf16>
    %c0_7 = arith.constant 0 : index
    %c0_8 = arith.constant 0 : index
    %5 = vector.load %arg1[%c0_7, %c0_8] : memref<16x32xbf16, #tpu.memory_space<vmem>>, vector<16x32xbf16>
    %cst = arith.constant dense<0.000000e+00> : vector<16x32xf32>
    %6 = tpu.matmul %4, %5, %cst {dimension_numbers = #tpu.dot_dimension_numbers<[1], [0], [0], [1], [0, 0, 1, 1], [], []>} : vector<16x16xbf16>, vector<16x32xbf16>, vector<16x32xf32> -> vector<16x32xf32>
    %c0_9 = arith.constant 0 : index
    %c0_10 = arith.constant 0 : index
    %7 = vector.load %arg2[%c0_9, %c0_10] : memref<16x32xf32, #tpu.memory_space<vmem>>, vector<16x32xf32>
    %8 = arith.addf %6, %7 : vector<16x32xf32>
    %c0_11 = arith.constant 0 : index
    %c0_12 = arith.constant 0 : index
    %c0_13 = arith.constant 0 : index
    %9 = vector.load %arg3[%c0_11, %c0_12, %c0_13] : memref<2x32x384xbf16, #tpu.memory_space<vmem>>, vector<1x32x384xbf16>
    %10 = vector.shape_cast %9 : vector<1x32x384xbf16> to vector<32x384xbf16>
    %c0_14 = arith.constant 0 : index
    %c0_15 = arith.constant 0 : index
    %c0_16 = arith.constant 0 : index
    %11 = vector.load %arg4[%c0_14, %c0_15, %c0_16] : memref<2x32x32xbf16, #tpu.memory_space<vmem>>, vector<1x32x32xbf16>
    %12 = vector.shape_cast %11 : vector<1x32x32xbf16> to vector<32x32xbf16>
    %c0_17 = arith.constant 0 : index
    %c0_18 = arith.constant 0 : index
    %c0_19 = arith.constant 0 : index
    %13 = vector.load %arg5[%c0_17, %c0_18, %c0_19] : memref<2x32x64xbf16, #tpu.memory_space<vmem>>, vector<1x32x64xbf16>
    %14 = vector.shape_cast %13 : vector<1x32x64xbf16> to vector<32x64xbf16>
    %c0_20 = arith.constant 0 : index
    %c0_21 = arith.constant 0 : index
    %c0_22 = arith.constant 0 : index
    %15 = vector.load %arg6[%c0_20, %c0_21, %c0_22] : memref<2x64x32xbf16, #tpu.memory_space<vmem>>, vector<1x64x32xbf16>
    %16 = vector.shape_cast %15 : vector<1x64x32xbf16> to vector<64x32xbf16>
    %c0_23 = arith.constant 0 : index
    %c0_24 = arith.constant 0 : index
    %c0_25 = arith.constant 0 : index
    %17 = vector.load %arg7[%c0_23, %c0_24, %c0_25] : memref<2x16x128xf32, #tpu.memory_space<vmem>>, vector<1x16x128xf32>
    %18 = vector.shape_cast %17 : vector<1x16x128xf32> to vector<16x128xf32>
    %19 = arith.truncf %8 : vector<16x32xf32> to vector<16x32xbf16>
    %cst_26 = arith.constant dense<0.000000e+00> : vector<16x384xf32>
    %20 = tpu.matmul %19, %10, %cst_26 {dimension_numbers = #tpu.dot_dimension_numbers<[1], [0], [0], [1], [0, 0, 1, 1], [], []>} : vector<16x32xbf16>, vector<32x384xbf16>, vector<16x384xf32> -> vector<16x384xf32>
    %21 = vector.extract_strided_slice %20 {offsets = [0, 0], sizes = [16, 32], strides = [1, 1]} : vector<16x384xf32> to vector<16x32xf32>
    %22 = vector.extract_strided_slice %18 {offsets = [0, 0], sizes = [1, 32], strides = [1, 1]} : vector<16x128xf32> to vector<1x32xf32>
    %23 = vector.broadcast %22 : vector<1x32xf32> to vector<16x32xf32>
    %24 = arith.addf %21, %23 : vector<16x32xf32>
    %25 = vector.extract_strided_slice %20 {offsets = [0, 128], sizes = [16, 32], strides = [1, 1]} : vector<16x384xf32> to vector<16x32xf32>
    %26 = vector.extract_strided_slice %18 {offsets = [1, 0], sizes = [1, 32], strides = [1, 1]} : vector<16x128xf32> to vector<1x32xf32>
    %27 = vector.broadcast %26 : vector<1x32xf32> to vector<16x32xf32>
    %28 = arith.addf %25, %27 : vector<16x32xf32>
    %29 = vector.extract_strided_slice %20 {offsets = [0, 256], sizes = [16, 32], strides = [1, 1]} : vector<16x384xf32> to vector<16x32xf32>
    %30 = vector.extract_strided_slice %18 {offsets = [2, 0], sizes = [1, 32], strides = [1, 1]} : vector<16x128xf32> to vector<1x32xf32>
    %31 = vector.broadcast %30 : vector<1x32xf32> to vector<16x32xf32>
    %32 = arith.addf %29, %31 : vector<16x32xf32>
    %33 = vector.extract_strided_slice %28 {offsets = [0, 0], sizes = [8, 32], strides = [1, 1]} : vector<16x32xf32> to vector<8x32xf32>
    %34 = vector.extract_strided_slice %28 {offsets = [0, 0], sizes = [8, 32], strides = [1, 1]} : vector<16x32xf32> to vector<8x32xf32>
    %35 = vector.extract_strided_slice %28 {offsets = [0, 0], sizes = [8, 32], strides = [1, 1]} : vector<16x32xf32> to vector<8x32xf32>
    %36 = vector.extract_strided_slice %28 {offsets = [0, 0], sizes = [8, 32], strides = [1, 1]} : vector<16x32xf32> to vector<8x32xf32>
    %37 = vector.extract_strided_slice %28 {offsets = [8, 0], sizes = [8, 32], strides = [1, 1]} : vector<16x32xf32> to vector<8x32xf32>
    %38 = vector.extract_strided_slice %28 {offsets = [8, 0], sizes = [8, 32], strides = [1, 1]} : vector<16x32xf32> to vector<8x32xf32>
    %39 = vector.extract_strided_slice %28 {offsets = [8, 0], sizes = [8, 32], strides = [1, 1]} : vector<16x32xf32> to vector<8x32xf32>
    %40 = vector.extract_strided_slice %28 {offsets = [8, 0], sizes = [8, 32], strides = [1, 1]} : vector<16x32xf32> to vector<8x32xf32>
    %41 = tpu.concatenate %33, %34, %35, %36, %37, %38, %39, %40 in 0 : vector<8x32xf32>, vector<8x32xf32>, vector<8x32xf32>, vector<8x32xf32>, vector<8x32xf32>, vector<8x32xf32>, vector<8x32xf32>, vector<8x32xf32> -> vector<64x32xf32>
    %42 = vector.extract_strided_slice %32 {offsets = [0, 0], sizes = [8, 32], strides = [1, 1]} : vector<16x32xf32> to vector<8x32xf32>
    %43 = vector.extract_strided_slice %32 {offsets = [0, 0], sizes = [8, 32], strides = [1, 1]} : vector<16x32xf32> to vector<8x32xf32>
    %44 = vector.extract_strided_slice %32 {offsets = [0, 0], sizes = [8, 32], strides = [1, 1]} : vector<16x32xf32> to vector<8x32xf32>
    %45 = vector.extract_strided_slice %32 {offsets = [0, 0], sizes = [8, 32], strides = [1, 1]} : vector<16x32xf32> to vector<8x32xf32>
    %46 = vector.extract_strided_slice %32 {offsets = [8, 0], sizes = [8, 32], strides = [1, 1]} : vector<16x32xf32> to vector<8x32xf32>
    %47 = vector.extract_strided_slice %32 {offsets = [8, 0], sizes = [8, 32], strides = [1, 1]} : vector<16x32xf32> to vector<8x32xf32>
    %48 = vector.extract_strided_slice %32 {offsets = [8, 0], sizes = [8, 32], strides = [1, 1]} : vector<16x32xf32> to vector<8x32xf32>
    %49 = vector.extract_strided_slice %32 {offsets = [8, 0], sizes = [8, 32], strides = [1, 1]} : vector<16x32xf32> to vector<8x32xf32>
    %50 = tpu.concatenate %42, %43, %44, %45, %46, %47, %48, %49 in 0 : vector<8x32xf32>, vector<8x32xf32>, vector<8x32xf32>, vector<8x32xf32>, vector<8x32xf32>, vector<8x32xf32>, vector<8x32xf32>, vector<8x32xf32> -> vector<64x32xf32>
    %51 = arith.mulf %41, %0 : vector<64x32xf32>
    %52 = arith.truncf %51 : vector<64x32xf32> to vector<64x32xbf16>
    %53 = arith.mulf %50, %0 : vector<64x32xf32>
    %54 = arith.truncf %53 : vector<64x32xf32> to vector<64x32xbf16>
    %55 = arith.truncf %24 : vector<16x32xf32> to vector<16x32xbf16>
    "tpu.trace_start"() <{level = 10 : i32, message = "qd,kd->qk"}> : () -> ()
    %cst_27 = arith.constant dense<0.000000e+00> : vector<16x64xf32>
    %56 = tpu.matmul %55, %52, %cst_27 {dimension_numbers = #tpu.dot_dimension_numbers<[1], [1], [0], [0], [0, 0, 1, 0], [], []>} : vector<16x32xbf16>, vector<64x32xbf16>, vector<16x64xf32> -> vector<16x64xf32>
    "tpu.trace_stop"() : () -> ()
    %cst_28 = arith.constant dense<0xFF800000> : vector<16xf32>
    %57 = vector.multi_reduction <maximumf>, %56, %cst_28 [1] : vector<16x64xf32> to vector<16xf32>
    %58 = vector.shape_cast %57 : vector<16xf32> to vector<16x1xf32>
    %59 = vector.broadcast %58 : vector<16x1xf32> to vector<16x64xf32>
    %60 = arith.subf %56, %59 : vector<16x64xf32>
    %61 = math.exp %60 : vector<16x64xf32>
    %62 = arith.mulf %61, %1 : vector<16x64xf32>
    %63 = arith.truncf %62 : vector<16x64xf32> to vector<16x64xbf16>
    %cst_29 = arith.constant dense<0.000000e+00> : vector<16x64xf32>
    %64 = tpu.matmul %63, %2, %cst_29 {dimension_numbers = #tpu.dot_dimension_numbers<[1], [0], [0], [1], [0, 0, 1, 1], [], []>} : vector<16x64xbf16>, vector<64x64xbf16>, vector<16x64xf32> -> vector<16x64xf32>
    %65 = tpu.reciprocal %64 {approx = true} : vector<16x64xf32> -> vector<16x64xf32>
    %66 = arith.mulf %62, %65 : vector<16x64xf32>
    %67 = arith.truncf %66 : vector<16x64xf32> to vector<16x64xbf16>
    %cst_30 = arith.constant dense<0.000000e+00> : vector<16x32xf32>
    %68 = tpu.matmul %67, %54, %cst_30 {dimension_numbers = #tpu.dot_dimension_numbers<[1], [0], [0], [1], [0, 0, 1, 1], [], []>} : vector<16x64xbf16>, vector<64x32xbf16>, vector<16x32xf32> -> vector<16x32xf32>
    %69 = arith.truncf %68 : vector<16x32xf32> to vector<16x32xbf16>
    %cst_31 = arith.constant dense<0.000000e+00> : vector<16x32xf32>
    %70 = tpu.matmul %69, %12, %cst_31 {dimension_numbers = #tpu.dot_dimension_numbers<[1], [0], [0], [1], [0, 0, 1, 1], [], []>} : vector<16x32xbf16>, vector<32x32xbf16>, vector<16x32xf32> -> vector<16x32xf32>
    %71 = vector.extract_strided_slice %18 {offsets = [3, 0], sizes = [1, 32], strides = [1, 1]} : vector<16x128xf32> to vector<1x32xf32>
    %72 = vector.broadcast %71 : vector<1x32xf32> to vector<16x32xf32>
    %73 = arith.addf %70, %72 : vector<16x32xf32>
    %74 = arith.addf %8, %73 : vector<16x32xf32>
    %75 = vector.extract_strided_slice %18 {offsets = [4, 0], sizes = [1, 32], strides = [1, 1]} : vector<16x128xf32> to vector<1x32xf32>
    %76 = vector.extract_strided_slice %18 {offsets = [5, 0], sizes = [1, 32], strides = [1, 1]} : vector<16x128xf32> to vector<1x32xf32>
    %cst_32 = arith.constant dense<0.000000e+00> : vector<16xf32>
    %77 = vector.multi_reduction <add>, %74, %cst_32 [1] : vector<16x32xf32> to vector<16xf32>
    %78 = vector.shape_cast %77 : vector<16xf32> to vector<16x1xf32>
    %cst_33 = arith.constant 3.200000e+01 : f32
    %79 = vector.broadcast %cst_33 : f32 to vector<16x1xf32>
    %80 = arith.divf %78, %79 : vector<16x1xf32>
    %81 = arith.mulf %74, %74 : vector<16x32xf32>
    %cst_34 = arith.constant dense<0.000000e+00> : vector<16xf32>
    %82 = vector.multi_reduction <add>, %81, %cst_34 [1] : vector<16x32xf32> to vector<16xf32>
    %83 = vector.shape_cast %82 : vector<16xf32> to vector<16x1xf32>
    %cst_35 = arith.constant 3.200000e+01 : f32
    %84 = vector.broadcast %cst_35 : f32 to vector<16x1xf32>
    %85 = arith.divf %83, %84 : vector<16x1xf32>
    %86 = arith.mulf %80, %80 : vector<16x1xf32>
    %87 = arith.subf %85, %86 : vector<16x1xf32>
    %cst_36 = arith.constant 0.000000e+00 : f32
    %88 = vector.broadcast %cst_36 : f32 to vector<16x1xf32>
    %89 = arith.maximumf %87, %88 : vector<16x1xf32>
    %cst_37 = arith.constant 9.99999974E-6 : f32
    %90 = vector.broadcast %cst_37 : f32 to vector<16x1xf32>
    %91 = arith.addf %89, %90 : vector<16x1xf32>
    %92 = math.rsqrt %91 : vector<16x1xf32>
    %93 = vector.broadcast %80 : vector<16x1xf32> to vector<16x32xf32>
    %94 = arith.subf %74, %93 : vector<16x32xf32>
    %95 = vector.broadcast %92 : vector<16x1xf32> to vector<16x32xf32>
    %96 = arith.mulf %94, %95 : vector<16x32xf32>
    %97 = vector.broadcast %75 : vector<1x32xf32> to vector<16x32xf32>
    %98 = arith.mulf %96, %97 : vector<16x32xf32>
    %99 = vector.broadcast %76 : vector<1x32xf32> to vector<16x32xf32>
    %100 = arith.addf %98, %99 : vector<16x32xf32>
    %101 = arith.truncf %100 : vector<16x32xf32> to vector<16x32xbf16>
    %cst_38 = arith.constant dense<0.000000e+00> : vector<16x64xf32>
    %102 = tpu.matmul %101, %14, %cst_38 {dimension_numbers = #tpu.dot_dimension_numbers<[1], [0], [0], [1], [0, 0, 1, 1], [], []>} : vector<16x32xbf16>, vector<32x64xbf16>, vector<16x64xf32> -> vector<16x64xf32>
    %103 = vector.extract_strided_slice %18 {offsets = [6, 0], sizes = [1, 64], strides = [1, 1]} : vector<16x128xf32> to vector<1x64xf32>
    %104 = vector.broadcast %103 : vector<1x64xf32> to vector<16x64xf32>
    %105 = arith.addf %102, %104 : vector<16x64xf32>
    %cst_39 = arith.constant 0.000000e+00 : f32
    %106 = vector.broadcast %cst_39 : f32 to vector<16x64xf32>
    %107 = arith.maximumf %105, %106 : vector<16x64xf32>
    %108 = arith.truncf %107 : vector<16x64xf32> to vector<16x64xbf16>
    %cst_40 = arith.constant dense<0.000000e+00> : vector<16x32xf32>
    %109 = tpu.matmul %108, %16, %cst_40 {dimension_numbers = #tpu.dot_dimension_numbers<[1], [0], [0], [1], [0, 0, 1, 1], [], []>} : vector<16x64xbf16>, vector<64x32xbf16>, vector<16x32xf32> -> vector<16x32xf32>
    %110 = vector.extract_strided_slice %18 {offsets = [7, 0], sizes = [1, 32], strides = [1, 1]} : vector<16x128xf32> to vector<1x32xf32>
    %111 = vector.broadcast %110 : vector<1x32xf32> to vector<16x32xf32>
    %112 = arith.addf %109, %111 : vector<16x32xf32>
    %113 = arith.addf %100, %112 : vector<16x32xf32>
    %114 = vector.extract_strided_slice %18 {offsets = [8, 0], sizes = [1, 32], strides = [1, 1]} : vector<16x128xf32> to vector<1x32xf32>
    %115 = vector.extract_strided_slice %18 {offsets = [9, 0], sizes = [1, 32], strides = [1, 1]} : vector<16x128xf32> to vector<1x32xf32>
    %cst_41 = arith.constant dense<0.000000e+00> : vector<16xf32>
    %116 = vector.multi_reduction <add>, %113, %cst_41 [1] : vector<16x32xf32> to vector<16xf32>
    %117 = vector.shape_cast %116 : vector<16xf32> to vector<16x1xf32>
    %cst_42 = arith.constant 3.200000e+01 : f32
    %118 = vector.broadcast %cst_42 : f32 to vector<16x1xf32>
    %119 = arith.divf %117, %118 : vector<16x1xf32>
    %120 = arith.mulf %113, %113 : vector<16x32xf32>
    %cst_43 = arith.constant dense<0.000000e+00> : vector<16xf32>
    %121 = vector.multi_reduction <add>, %120, %cst_43 [1] : vector<16x32xf32> to vector<16xf32>
    %122 = vector.shape_cast %121 : vector<16xf32> to vector<16x1xf32>
    %cst_44 = arith.constant 3.200000e+01 : f32
    %123 = vector.broadcast %cst_44 : f32 to vector<16x1xf32>
    %124 = arith.divf %122, %123 : vector<16x1xf32>
    %125 = arith.mulf %119, %119 : vector<16x1xf32>
    %126 = arith.subf %124, %125 : vector<16x1xf32>
    %cst_45 = arith.constant 0.000000e+00 : f32
    %127 = vector.broadcast %cst_45 : f32 to vector<16x1xf32>
    %128 = arith.maximumf %126, %127 : vector<16x1xf32>
    %cst_46 = arith.constant 9.99999974E-6 : f32
    %129 = vector.broadcast %cst_46 : f32 to vector<16x1xf32>
    %130 = arith.addf %128, %129 : vector<16x1xf32>
    %131 = math.rsqrt %130 : vector<16x1xf32>
    %132 = vector.broadcast %119 : vector<16x1xf32> to vector<16x32xf32>
    %133 = arith.subf %113, %132 : vector<16x32xf32>
    %134 = vector.broadcast %131 : vector<16x1xf32> to vector<16x32xf32>
    %135 = arith.mulf %133, %134 : vector<16x32xf32>
    %136 = vector.broadcast %114 : vector<1x32xf32> to vector<16x32xf32>
    %137 = arith.mulf %135, %136 : vector<16x32xf32>
    %138 = vector.broadcast %115 : vector<1x32xf32> to vector<16x32xf32>
    %139 = arith.addf %137, %138 : vector<16x32xf32>
    %c1 = arith.constant 1 : index
    %c0_47 = arith.constant 0 : index
    %c0_48 = arith.constant 0 : index
    %140 = vector.load %arg3[%c1, %c0_47, %c0_48] : memref<2x32x384xbf16, #tpu.memory_space<vmem>>, vector<1x32x384xbf16>
    %141 = vector.shape_cast %140 : vector<1x32x384xbf16> to vector<32x384xbf16>
    %c1_49 = arith.constant 1 : index
    %c0_50 = arith.constant 0 : index
    %c0_51 = arith.constant 0 : index
    %142 = vector.load %arg4[%c1_49, %c0_50, %c0_51] : memref<2x32x32xbf16, #tpu.memory_space<vmem>>, vector<1x32x32xbf16>
    %143 = vector.shape_cast %142 : vector<1x32x32xbf16> to vector<32x32xbf16>
    %c1_52 = arith.constant 1 : index
    %c0_53 = arith.constant 0 : index
    %c0_54 = arith.constant 0 : index
    %144 = vector.load %arg5[%c1_52, %c0_53, %c0_54] : memref<2x32x64xbf16, #tpu.memory_space<vmem>>, vector<1x32x64xbf16>
    %145 = vector.shape_cast %144 : vector<1x32x64xbf16> to vector<32x64xbf16>
    %c1_55 = arith.constant 1 : index
    %c0_56 = arith.constant 0 : index
    %c0_57 = arith.constant 0 : index
    %146 = vector.load %arg6[%c1_55, %c0_56, %c0_57] : memref<2x64x32xbf16, #tpu.memory_space<vmem>>, vector<1x64x32xbf16>
    %147 = vector.shape_cast %146 : vector<1x64x32xbf16> to vector<64x32xbf16>
    %c1_58 = arith.constant 1 : index
    %c0_59 = arith.constant 0 : index
    %c0_60 = arith.constant 0 : index
    %148 = vector.load %arg7[%c1_58, %c0_59, %c0_60] : memref<2x16x128xf32, #tpu.memory_space<vmem>>, vector<1x16x128xf32>
    %149 = vector.shape_cast %148 : vector<1x16x128xf32> to vector<16x128xf32>
    %150 = arith.truncf %139 : vector<16x32xf32> to vector<16x32xbf16>
    %cst_61 = arith.constant dense<0.000000e+00> : vector<16x384xf32>
    %151 = tpu.matmul %150, %141, %cst_61 {dimension_numbers = #tpu.dot_dimension_numbers<[1], [0], [0], [1], [0, 0, 1, 1], [], []>} : vector<16x32xbf16>, vector<32x384xbf16>, vector<16x384xf32> -> vector<16x384xf32>
    %152 = vector.extract_strided_slice %151 {offsets = [0, 0], sizes = [16, 32], strides = [1, 1]} : vector<16x384xf32> to vector<16x32xf32>
    %153 = vector.extract_strided_slice %149 {offsets = [0, 0], sizes = [1, 32], strides = [1, 1]} : vector<16x128xf32> to vector<1x32xf32>
    %154 = vector.broadcast %153 : vector<1x32xf32> to vector<16x32xf32>
    %155 = arith.addf %152, %154 : vector<16x32xf32>
    %156 = vector.extract_strided_slice %151 {offsets = [0, 128], sizes = [16, 32], strides = [1, 1]} : vector<16x384xf32> to vector<16x32xf32>
    %157 = vector.extract_strided_slice %149 {offsets = [1, 0], sizes = [1, 32], strides = [1, 1]} : vector<16x128xf32> to vector<1x32xf32>
    %158 = vector.broadcast %157 : vector<1x32xf32> to vector<16x32xf32>
    %159 = arith.addf %156, %158 : vector<16x32xf32>
    %160 = vector.extract_strided_slice %151 {offsets = [0, 256], sizes = [16, 32], strides = [1, 1]} : vector<16x384xf32> to vector<16x32xf32>
    %161 = vector.extract_strided_slice %149 {offsets = [2, 0], sizes = [1, 32], strides = [1, 1]} : vector<16x128xf32> to vector<1x32xf32>
    %162 = vector.broadcast %161 : vector<1x32xf32> to vector<16x32xf32>
    %163 = arith.addf %160, %162 : vector<16x32xf32>
    %164 = vector.extract_strided_slice %159 {offsets = [0, 0], sizes = [8, 32], strides = [1, 1]} : vector<16x32xf32> to vector<8x32xf32>
    %165 = vector.extract_strided_slice %159 {offsets = [0, 0], sizes = [8, 32], strides = [1, 1]} : vector<16x32xf32> to vector<8x32xf32>
    %166 = vector.extract_strided_slice %159 {offsets = [0, 0], sizes = [8, 32], strides = [1, 1]} : vector<16x32xf32> to vector<8x32xf32>
    %167 = vector.extract_strided_slice %159 {offsets = [0, 0], sizes = [8, 32], strides = [1, 1]} : vector<16x32xf32> to vector<8x32xf32>
    %168 = vector.extract_strided_slice %159 {offsets = [8, 0], sizes = [8, 32], strides = [1, 1]} : vector<16x32xf32> to vector<8x32xf32>
    %169 = vector.extract_strided_slice %159 {offsets = [8, 0], sizes = [8, 32], strides = [1, 1]} : vector<16x32xf32> to vector<8x32xf32>
    %170 = vector.extract_strided_slice %159 {offsets = [8, 0], sizes = [8, 32], strides = [1, 1]} : vector<16x32xf32> to vector<8x32xf32>
    %171 = vector.extract_strided_slice %159 {offsets = [8, 0], sizes = [8, 32], strides = [1, 1]} : vector<16x32xf32> to vector<8x32xf32>
    %172 = tpu.concatenate %164, %165, %166, %167, %168, %169, %170, %171 in 0 : vector<8x32xf32>, vector<8x32xf32>, vector<8x32xf32>, vector<8x32xf32>, vector<8x32xf32>, vector<8x32xf32>, vector<8x32xf32>, vector<8x32xf32> -> vector<64x32xf32>
    %173 = vector.extract_strided_slice %163 {offsets = [0, 0], sizes = [8, 32], strides = [1, 1]} : vector<16x32xf32> to vector<8x32xf32>
    %174 = vector.extract_strided_slice %163 {offsets = [0, 0], sizes = [8, 32], strides = [1, 1]} : vector<16x32xf32> to vector<8x32xf32>
    %175 = vector.extract_strided_slice %163 {offsets = [0, 0], sizes = [8, 32], strides = [1, 1]} : vector<16x32xf32> to vector<8x32xf32>
    %176 = vector.extract_strided_slice %163 {offsets = [0, 0], sizes = [8, 32], strides = [1, 1]} : vector<16x32xf32> to vector<8x32xf32>
    %177 = vector.extract_strided_slice %163 {offsets = [8, 0], sizes = [8, 32], strides = [1, 1]} : vector<16x32xf32> to vector<8x32xf32>
    %178 = vector.extract_strided_slice %163 {offsets = [8, 0], sizes = [8, 32], strides = [1, 1]} : vector<16x32xf32> to vector<8x32xf32>
    %179 = vector.extract_strided_slice %163 {offsets = [8, 0], sizes = [8, 32], strides = [1, 1]} : vector<16x32xf32> to vector<8x32xf32>
    %180 = vector.extract_strided_slice %163 {offsets = [8, 0], sizes = [8, 32], strides = [1, 1]} : vector<16x32xf32> to vector<8x32xf32>
    %181 = tpu.concatenate %173, %174, %175, %176, %177, %178, %179, %180 in 0 : vector<8x32xf32>, vector<8x32xf32>, vector<8x32xf32>, vector<8x32xf32>, vector<8x32xf32>, vector<8x32xf32>, vector<8x32xf32>, vector<8x32xf32> -> vector<64x32xf32>
    %182 = arith.mulf %172, %0 : vector<64x32xf32>
    %183 = arith.truncf %182 : vector<64x32xf32> to vector<64x32xbf16>
    %184 = arith.mulf %181, %0 : vector<64x32xf32>
    %185 = arith.truncf %184 : vector<64x32xf32> to vector<64x32xbf16>
    %186 = arith.truncf %155 : vector<16x32xf32> to vector<16x32xbf16>
    "tpu.trace_start"() <{level = 10 : i32, message = "qd,kd->qk"}> : () -> ()
    %cst_62 = arith.constant dense<0.000000e+00> : vector<16x64xf32>
    %187 = tpu.matmul %186, %183, %cst_62 {dimension_numbers = #tpu.dot_dimension_numbers<[1], [1], [0], [0], [0, 0, 1, 0], [], []>} : vector<16x32xbf16>, vector<64x32xbf16>, vector<16x64xf32> -> vector<16x64xf32>
    "tpu.trace_stop"() : () -> ()
    %cst_63 = arith.constant dense<0xFF800000> : vector<16xf32>
    %188 = vector.multi_reduction <maximumf>, %187, %cst_63 [1] : vector<16x64xf32> to vector<16xf32>
    %189 = vector.shape_cast %188 : vector<16xf32> to vector<16x1xf32>
    %190 = vector.broadcast %189 : vector<16x1xf32> to vector<16x64xf32>
    %191 = arith.subf %187, %190 : vector<16x64xf32>
    %192 = math.exp %191 : vector<16x64xf32>
    %193 = arith.mulf %192, %1 : vector<16x64xf32>
    %194 = arith.truncf %193 : vector<16x64xf32> to vector<16x64xbf16>
    %cst_64 = arith.constant dense<0.000000e+00> : vector<16x64xf32>
    %195 = tpu.matmul %194, %2, %cst_64 {dimension_numbers = #tpu.dot_dimension_numbers<[1], [0], [0], [1], [0, 0, 1, 1], [], []>} : vector<16x64xbf16>, vector<64x64xbf16>, vector<16x64xf32> -> vector<16x64xf32>
    %196 = tpu.reciprocal %195 {approx = true} : vector<16x64xf32> -> vector<16x64xf32>
    %197 = arith.mulf %193, %196 : vector<16x64xf32>
    %198 = arith.truncf %197 : vector<16x64xf32> to vector<16x64xbf16>
    %cst_65 = arith.constant dense<0.000000e+00> : vector<16x32xf32>
    %199 = tpu.matmul %198, %185, %cst_65 {dimension_numbers = #tpu.dot_dimension_numbers<[1], [0], [0], [1], [0, 0, 1, 1], [], []>} : vector<16x64xbf16>, vector<64x32xbf16>, vector<16x32xf32> -> vector<16x32xf32>
    %200 = arith.truncf %199 : vector<16x32xf32> to vector<16x32xbf16>
    %cst_66 = arith.constant dense<0.000000e+00> : vector<16x32xf32>
    %201 = tpu.matmul %200, %143, %cst_66 {dimension_numbers = #tpu.dot_dimension_numbers<[1], [0], [0], [1], [0, 0, 1, 1], [], []>} : vector<16x32xbf16>, vector<32x32xbf16>, vector<16x32xf32> -> vector<16x32xf32>
    %202 = vector.extract_strided_slice %149 {offsets = [3, 0], sizes = [1, 32], strides = [1, 1]} : vector<16x128xf32> to vector<1x32xf32>
    %203 = vector.broadcast %202 : vector<1x32xf32> to vector<16x32xf32>
    %204 = arith.addf %201, %203 : vector<16x32xf32>
    %205 = arith.addf %139, %204 : vector<16x32xf32>
    %206 = vector.extract_strided_slice %149 {offsets = [4, 0], sizes = [1, 32], strides = [1, 1]} : vector<16x128xf32> to vector<1x32xf32>
    %207 = vector.extract_strided_slice %149 {offsets = [5, 0], sizes = [1, 32], strides = [1, 1]} : vector<16x128xf32> to vector<1x32xf32>
    %cst_67 = arith.constant dense<0.000000e+00> : vector<16xf32>
    %208 = vector.multi_reduction <add>, %205, %cst_67 [1] : vector<16x32xf32> to vector<16xf32>
    %209 = vector.shape_cast %208 : vector<16xf32> to vector<16x1xf32>
    %cst_68 = arith.constant 3.200000e+01 : f32
    %210 = vector.broadcast %cst_68 : f32 to vector<16x1xf32>
    %211 = arith.divf %209, %210 : vector<16x1xf32>
    %212 = arith.mulf %205, %205 : vector<16x32xf32>
    %cst_69 = arith.constant dense<0.000000e+00> : vector<16xf32>
    %213 = vector.multi_reduction <add>, %212, %cst_69 [1] : vector<16x32xf32> to vector<16xf32>
    %214 = vector.shape_cast %213 : vector<16xf32> to vector<16x1xf32>
    %cst_70 = arith.constant 3.200000e+01 : f32
    %215 = vector.broadcast %cst_70 : f32 to vector<16x1xf32>
    %216 = arith.divf %214, %215 : vector<16x1xf32>
    %217 = arith.mulf %211, %211 : vector<16x1xf32>
    %218 = arith.subf %216, %217 : vector<16x1xf32>
    %cst_71 = arith.constant 0.000000e+00 : f32
    %219 = vector.broadcast %cst_71 : f32 to vector<16x1xf32>
    %220 = arith.maximumf %218, %219 : vector<16x1xf32>
    %cst_72 = arith.constant 9.99999974E-6 : f32
    %221 = vector.broadcast %cst_72 : f32 to vector<16x1xf32>
    %222 = arith.addf %220, %221 : vector<16x1xf32>
    %223 = math.rsqrt %222 : vector<16x1xf32>
    %224 = vector.broadcast %211 : vector<16x1xf32> to vector<16x32xf32>
    %225 = arith.subf %205, %224 : vector<16x32xf32>
    %226 = vector.broadcast %223 : vector<16x1xf32> to vector<16x32xf32>
    %227 = arith.mulf %225, %226 : vector<16x32xf32>
    %228 = vector.broadcast %206 : vector<1x32xf32> to vector<16x32xf32>
    %229 = arith.mulf %227, %228 : vector<16x32xf32>
    %230 = vector.broadcast %207 : vector<1x32xf32> to vector<16x32xf32>
    %231 = arith.addf %229, %230 : vector<16x32xf32>
    %232 = arith.truncf %231 : vector<16x32xf32> to vector<16x32xbf16>
    %cst_73 = arith.constant dense<0.000000e+00> : vector<16x64xf32>
    %233 = tpu.matmul %232, %145, %cst_73 {dimension_numbers = #tpu.dot_dimension_numbers<[1], [0], [0], [1], [0, 0, 1, 1], [], []>} : vector<16x32xbf16>, vector<32x64xbf16>, vector<16x64xf32> -> vector<16x64xf32>
    %234 = vector.extract_strided_slice %149 {offsets = [6, 0], sizes = [1, 64], strides = [1, 1]} : vector<16x128xf32> to vector<1x64xf32>
    %235 = vector.broadcast %234 : vector<1x64xf32> to vector<16x64xf32>
    %236 = arith.addf %233, %235 : vector<16x64xf32>
    %cst_74 = arith.constant 0.000000e+00 : f32
    %237 = vector.broadcast %cst_74 : f32 to vector<16x64xf32>
    %238 = arith.maximumf %236, %237 : vector<16x64xf32>
    %239 = arith.truncf %238 : vector<16x64xf32> to vector<16x64xbf16>
    %cst_75 = arith.constant dense<0.000000e+00> : vector<16x32xf32>
    %240 = tpu.matmul %239, %147, %cst_75 {dimension_numbers = #tpu.dot_dimension_numbers<[1], [0], [0], [1], [0, 0, 1, 1], [], []>} : vector<16x64xbf16>, vector<64x32xbf16>, vector<16x32xf32> -> vector<16x32xf32>
    %241 = vector.extract_strided_slice %149 {offsets = [7, 0], sizes = [1, 32], strides = [1, 1]} : vector<16x128xf32> to vector<1x32xf32>
    %242 = vector.broadcast %241 : vector<1x32xf32> to vector<16x32xf32>
    %243 = arith.addf %240, %242 : vector<16x32xf32>
    %244 = arith.addf %231, %243 : vector<16x32xf32>
    %245 = vector.extract_strided_slice %149 {offsets = [8, 0], sizes = [1, 32], strides = [1, 1]} : vector<16x128xf32> to vector<1x32xf32>
    %246 = vector.extract_strided_slice %149 {offsets = [9, 0], sizes = [1, 32], strides = [1, 1]} : vector<16x128xf32> to vector<1x32xf32>
    %cst_76 = arith.constant dense<0.000000e+00> : vector<16xf32>
    %247 = vector.multi_reduction <add>, %244, %cst_76 [1] : vector<16x32xf32> to vector<16xf32>
    %248 = vector.shape_cast %247 : vector<16xf32> to vector<16x1xf32>
    %cst_77 = arith.constant 3.200000e+01 : f32
    %249 = vector.broadcast %cst_77 : f32 to vector<16x1xf32>
    %250 = arith.divf %248, %249 : vector<16x1xf32>
    %251 = arith.mulf %244, %244 : vector<16x32xf32>
    %cst_78 = arith.constant dense<0.000000e+00> : vector<16xf32>
    %252 = vector.multi_reduction <add>, %251, %cst_78 [1] : vector<16x32xf32> to vector<16xf32>
    %253 = vector.shape_cast %252 : vector<16xf32> to vector<16x1xf32>
    %cst_79 = arith.constant 3.200000e+01 : f32
    %254 = vector.broadcast %cst_79 : f32 to vector<16x1xf32>
    %255 = arith.divf %253, %254 : vector<16x1xf32>
    %256 = arith.mulf %250, %250 : vector<16x1xf32>
    %257 = arith.subf %255, %256 : vector<16x1xf32>
    %cst_80 = arith.constant 0.000000e+00 : f32
    %258 = vector.broadcast %cst_80 : f32 to vector<16x1xf32>
    %259 = arith.maximumf %257, %258 : vector<16x1xf32>
    %cst_81 = arith.constant 9.99999974E-6 : f32
    %260 = vector.broadcast %cst_81 : f32 to vector<16x1xf32>
    %261 = arith.addf %259, %260 : vector<16x1xf32>
    %262 = math.rsqrt %261 : vector<16x1xf32>
    %263 = vector.broadcast %250 : vector<16x1xf32> to vector<16x32xf32>
    %264 = arith.subf %244, %263 : vector<16x32xf32>
    %265 = vector.broadcast %262 : vector<16x1xf32> to vector<16x32xf32>
    %266 = arith.mulf %264, %265 : vector<16x32xf32>
    %267 = vector.broadcast %245 : vector<1x32xf32> to vector<16x32xf32>
    %268 = arith.mulf %266, %267 : vector<16x32xf32>
    %269 = vector.broadcast %246 : vector<1x32xf32> to vector<16x32xf32>
    %270 = arith.addf %268, %269 : vector<16x32xf32>
    %271 = arith.truncf %270 : vector<16x32xf32> to vector<16x32xbf16>
    %c0_82 = arith.constant 0 : index
    %c0_83 = arith.constant 0 : index
    %272 = vector.load %arg8[%c0_82, %c0_83] : memref<32x128xbf16, #tpu.memory_space<vmem>>, vector<32x128xbf16>
    %cst_84 = arith.constant dense<0.000000e+00> : vector<16x128xf32>
    %273 = tpu.matmul %271, %272, %cst_84 {dimension_numbers = #tpu.dot_dimension_numbers<[1], [0], [0], [1], [0, 0, 1, 1], [], []>} : vector<16x32xbf16>, vector<32x128xbf16>, vector<16x128xf32> -> vector<16x128xf32>
    %c0_85 = arith.constant 0 : index
    %c0_86 = arith.constant 0 : index
    %274 = vector.load %arg9[%c0_85, %c0_86] : memref<1x128xf32, #tpu.memory_space<vmem>>, vector<1x128xf32>
    %275 = vector.broadcast %274 : vector<1x128xf32> to vector<16x128xf32>
    %276 = arith.addf %273, %275 : vector<16x128xf32>
    %c0_87 = arith.constant 0 : index
    %c0_88 = arith.constant 0 : index
    %277 = vector.load %arg13[%c0_87, %c0_88] : memref<16x128xf32, #tpu.memory_space<vmem>>, vector<16x128xf32>
    tpu.vector_store %arg13[%c0_87, %c0_88], %276 {strides = array<i32>} : memref<16x128xf32, #tpu.memory_space<vmem>>, vector<16x128xf32>,
    return
  }
}

</mosaic_0001>

<bundles_post_ra>
// kernel: model_forward.1
= control target key start
LH: loop header
LB: loop body
LE: loop exit
PB: predicated region body
PF: predicated region fallthrough
CT: control target
= control target key end

     0   :  { %18 = vsyncpa [#allocation3], 0  ;;  %s2710_s0 = inlined_call_operand.hbm [shape: f32[16,16], index: 0, kind: input, shape index: {}]   ;;  %s2711_s1 = inlined_call_operand.hbm [shape: bf16[16,32], index: 1, kind: input, shape index: {}]   ;;  %s2712_s2 = inlined_call_operand.hbm [shape: f32[16,32], index: 2, kind: input, shape index: {}]   ;;  %s2713_s3 = inlined_call_operand.vmem [shape: bf16[2,32,384], index: 3, kind: input, shape index: {}]   ;;  %s2714_s4 = inlined_call_operand.vmem [shape: bf16[2,32,32], index: 4, kind: input, shape index: {}]   ;;  %s2715_s5 = inlined_call_operand.vmem [shape: bf16[2,32,64], index: 5, kind: input, shape index: {}]   ;;  %s2716_s6 = inlined_call_operand.vmem [shape: bf16[2,64,32], index: 6, kind: input, shape index: {}]   ;;  %s2717_s7 = inlined_call_operand.vmem [shape: f32[2,16,128], index: 7, kind: input, shape index: {}]   ;;  %s2718_s8 = inlined_call_operand.hbm [shape: bf16[32,128], index: 8, kind: input, shape index: {}]   ;;  %s2719_s9 = inlined_call_operand.vmem [shape: f32[1,128], index: 9, kind: input, shape index: {}]   ;;  %s2720_s10 = inlined_call_operand.vmem [shape: f32[64,32], index: 10, kind: input, shape index: {}]   ;;  %s2721_s11 = inlined_call_operand.hbm [shape: f32[16,64], index: 11, kind: input, shape index: {}]   ;;  %s2722_s12 = inlined_call_operand.hbm [shape: bf16[64,64], index: 12, kind: input, shape index: {}]   ;;  %s2723_s13 = inlined_call_operand.vmem [shape: f32[16,128], index: 13, kind: output, shape index: {}]  }
   0x1   :  { %19 = vsyncpa [#allocation5], 0 }
   0x2   :  { %20 = vsyncpa [#allocation8], 0 }
   0x3   :  { %21 = vsyncpa [#allocation11], 0  ;;  %s2122_s25 = smov [#allocation4]   ;;  %s1982_s29 = scalar_lea.hbm %s2711_s1, 128 }
   0x4   :  { %s39_s26 = sshll.u32 %s2122_s25, 4  ;;  %p1983_p0 = scmp.ne.s32.totalorder %s2711_s1, %s1982_s29  ;;  %s40_s26 = int_to_ptr.vmem [resolvable:$true] %s39_s26 }
   0x5   :  { %p1986_p1 = scmp.lt.u32.totalorder %s1982_s29, %s2711_s1 }
   0x7   :  { %p1988_p2 = pnand %p1986_p1, %p1983_p0 }
   0x9   :  { %1991 = shalt.err (!%p1988_p2)
}
   0xa   :  { %s1992_s17 = scalar_lea.vmem %s40_s26, 128  ;;  %p1997_p4 = scmp.lt.s32.totalorder %s40_s26, %s40_s26 }
   0xb   :  { %p1993_p3 = scmp.ne.s32.totalorder %s40_s26, %s1992_s17  ;;  %p1998_p5 = scmp.lt.s32.totalorder %s1992_s17, %s1992_s17 }
   0xd   :  { %p1999_p6 = por %p1998_p5, %p1997_p4 }
   0xf   :  { %p2000_p7 = pnand %p1999_p6, %p1993_p3 }
  0x11   :  { %2003 = shalt.err (!%p2000_p7)
}
  0x12   :  { %s2123_s18 = smov 64   ;;  %s2124_s19 = smov 4  }
  0x13   :  { %45 = dma.hbm_to_vmem [thread:$0]  %s2711_s1, 128, %s40_s26, [#allocation5], %s2123_s18, %s2123_s18, %s2124_s19  }
  0x14   :  { %s2125_s22 = smov [#allocation7]   ;;  %s2126_s24 = smov [#allocation2]  }
  0x15   :  { %s73_s23 = sshll.u32 %s2125_s22, 4  ;;  %s27_s25 = sshll.u32 %s2126_s24, 4  ;;  %s74_s23 = int_to_ptr.vmem [resolvable:$true] %s73_s23  ;;  %s28_s25 = int_to_ptr.vmem [resolvable:$true] %s27_s25 }
  0x16   :  { %s2004_s29 = scalar_lea.hbm %s2718_s8, 256 }
  0x17   :  { %p2005_p8 = scmp.ne.s32.totalorder %s2718_s8, %s2004_s29  ;;  %p2008_p9 = scmp.lt.u32.totalorder %s2004_s29, %s2718_s8 }
  0x19   :  { %p2010_p10 = pnand %p2008_p9, %p2005_p8 }
  0x1b   :  { %2013 = shalt.err (!%p2010_p10)
}
  0x1c   :  { %s2014_s1 = scalar_lea.vmem %s74_s23, 256  ;;  %p2019_p12 = scmp.lt.s32.totalorder %s74_s23, %s74_s23 }
  0x1d   :  { %p2015_p11 = scmp.ne.s32.totalorder %s74_s23, %s2014_s1  ;;  %p2020_p13 = scmp.lt.s32.totalorder %s2014_s1, %s2014_s1 }
  0x1f   :  { %p2021_p0 = por %p2020_p13, %p2019_p12 }
  0x21   :  { %p2022_p1 = pnand %p2021_p0, %p2015_p11 }
  0x23   :  { %2025 = shalt.err (!%p2022_p1)
}
  0x24   :  { %79 = dma.hbm_to_vmem [thread:$0]  %s2718_s8, 256, %s74_s23, [#allocation8], %s2123_s18, %s2123_s18, %s2124_s19  }
  0x25   :  { %s2026_s22 = scalar_lea.hbm %s2710_s0, 256 }
  0x26   :  { %p2027_p2 = scmp.ne.s32.totalorder %s2710_s0, %s2026_s22  ;;  %p2030_p3 = scmp.lt.u32.totalorder %s2026_s22, %s2710_s0 }
  0x28   :  { %p2032_p4 = pnand %p2030_p3, %p2027_p2 }
  0x2a   :  { %2035 = shalt.err (!%p2032_p4)
}
  0x2b   :  { %s2036_s30 = scalar_lea.vmem %s28_s25, 256  ;;  %p2041_p6 = scmp.lt.s32.totalorder %s28_s25, %s28_s25 }
  0x2c   :  { %p2037_p5 = scmp.ne.s32.totalorder %s28_s25, %s2036_s30  ;;  %p2042_p7 = scmp.lt.s32.totalorder %s2036_s30, %s2036_s30 }
  0x2e   :  { %p2043_p8 = por %p2042_p7, %p2041_p6 }
  0x30   :  { %p2044_p9 = pnand %p2043_p8, %p2037_p5 }
  0x32   :  { %2047 = shalt.err (!%p2044_p9)
}
  0x33   :  { %s2127_s8 = smov 128   ;;  %s2128_s23 = smov 8  }
  0x34   :  { %33 = dma.hbm_to_vmem [thread:$0]  %s2710_s0, 256, %s28_s25, [#allocation3], %s2127_s8, %s2127_s8, %s2128_s23  }
  0x35   :  { %s2129_s16 = smov [#allocation6]   ;;  %s2130_s26 = smov [#allocation9]  }
  0x36   :  { %s51_s1 = sshll.u32 %s2129_s16, 4  ;;  %s89_s17 = sshll.u32 %s2130_s26, 4  ;;  %s52_s1 = int_to_ptr.vmem [resolvable:$true] %s51_s1  ;;  %s90_s17 = int_to_ptr.vmem [resolvable:$true] %s89_s17 }
  0x37   :  { %s2048_s22 = scalar_lea.hbm %s2712_s2, 256 }
  0x38   :  { %p2049_p10 = scmp.ne.s32.totalorder %s2712_s2, %s2048_s22  ;;  %p2052_p11 = scmp.lt.u32.totalorder %s2048_s22, %s2712_s2 }
  0x3a   :  { %p2054_p12 = pnand %p2052_p11, %p2049_p10 }
  0x3c   :  { %2057 = shalt.err (!%p2054_p12)
}
  0x3d   :  { %s2058_s0 = scalar_lea.vmem %s52_s1, 256  ;;  %p2063_p0 = scmp.lt.s32.totalorder %s52_s1, %s52_s1 }
  0x3e   :  { %p2059_p13 = scmp.ne.s32.totalorder %s52_s1, %s2058_s0  ;;  %p2064_p1 = scmp.lt.s32.totalorder %s2058_s0, %s2058_s0 }
  0x40   :  { %p2065_p2 = por %p2064_p1, %p2063_p0 }
  0x42   :  { %p2066_p3 = pnand %p2065_p2, %p2059_p13 }
  0x44   :  { %2069 = shalt.err (!%p2066_p3)
}
  0x45   :  { %57 = dma.hbm_to_vmem [thread:$0]  %s2712_s2, 256, %s52_s1, [#allocation5], %s2127_s8, %s2127_s8, %s2128_s23  }
  0x46   :  { %s2070_s16 = scalar_lea.hbm %s2721_s11, 256 }
  0x47   :  { %p2071_p4 = scmp.ne.s32.totalorder %s2721_s11, %s2070_s16  ;;  %p2074_p5 = scmp.lt.u32.totalorder %s2070_s16, %s2721_s11 }
  0x49   :  { %p2076_p6 = pnand %p2074_p5, %p2071_p4 }
  0x4b   :  { %2079 = shalt.err (!%p2076_p6)
}
  0x4c   :  { %s2080_s24 = scalar_lea.vmem %s90_s17, 256  ;;  %p2085_p8 = scmp.lt.s32.totalorder %s90_s17, %s90_s17 }
  0x4d   :  { %p2081_p7 = scmp.ne.s32.totalorder %s90_s17, %s2080_s24  ;;  %p2086_p9 = scmp.lt.s32.totalorder %s2080_s24, %s2080_s24 }
  0x4f   :  { %p2087_p10 = por %p2086_p9, %p2085_p8 }
  0x51   :  { %p2088_p11 = pnand %p2087_p10, %p2081_p7 }
  0x53   :  { %2091 = shalt.err (!%p2088_p11)
}
  0x54   :  { %95 = dma.hbm_to_vmem [thread:$0]  %s2721_s11, 256, %s90_s17, [#allocation8], %s2127_s8, %s2127_s8, %s2128_s23  }
  0x55   :  { %s2131_s27 = smov [#allocation10]   ;;  %s2092_s25 = scalar_lea.hbm %s2722_s12, 512 }
  0x56   :  { %s101_s28 = sshll.u32 %s2131_s27, 4  ;;  %p2093_p12 = scmp.ne.s32.totalorder %s2722_s12, %s2092_s25  ;;  %s102_s28 = int_to_ptr.vmem [resolvable:$true] %s101_s28 }
  0x57   :  { %p2096_p13 = scmp.lt.u32.totalorder %s2092_s25, %s2722_s12 }
  0x59   :  { %p2098_p0 = pnand %p2096_p13, %p2093_p12 }
  0x5b   :  { %2101 = shalt.err (!%p2098_p0)
}
  0x5c   :  { %s2102_s26 = scalar_lea.vmem %s102_s28, 512  ;;  %p2107_p2 = scmp.lt.s32.totalorder %s102_s28, %s102_s28 }
  0x5d   :  { %p2103_p1 = scmp.ne.s32.totalorder %s102_s28, %s2102_s26  ;;  %p2108_p3 = scmp.lt.s32.totalorder %s2102_s26, %s2102_s26 }
  0x5f   :  { %p2109_p4 = por %p2108_p3, %p2107_p2 }
  0x61   :  { %p2110_p5 = pnand %p2109_p4, %p2103_p1 }
  0x63   :  { %2113 = shalt.err (!%p2110_p5)
}
  0x64   :  { %107 = dma.hbm_to_vmem [thread:$0]  %s2722_s12, 512, %s102_s28, [#allocation11], %s2123_s18, %s2123_s18, %s2124_s19  }
  0x65   :  { %2114 = dma.done.wait [#allocation3], 256  }
  0x66   :  { %2115 = vsyncadd [#allocation3], 4294967040 }
  0x67   :  { %2116 = dma.done.wait [#allocation5], 384  }
  0x68   :  { %2117 = vsyncadd [#allocation5], 4294966912 }
  0x69   :  { %2118 = dma.done.wait [#allocation8], 512  }
  0x6a   :  { %2119 = vsyncadd [#allocation8], 4294966784 }
  0x6b   :  { %2120 = dma.done.wait [#allocation11], 512  }
  0x6c   :  { %2121 = vsyncadd [#allocation11], 4294966784  ;;  %v2132_v0 = vmov 0.0   ;;  %vm2133_vm0 = vmmov 0   ;;  %v1911_v1 = vld [vmem:[#allocation4] sm:$0xff]   ;;  %v145_v2 = vld [vmem:[#allocation2] sm:$0xff]  ;;  %v350_v21 = vlaneseq }
  0x6d   :  { %1740 = vmatprep.subr.bf16.mxu0 %v2132_v0  ;;  %1742 = vmatprep.mubr.msk.bf16.mxu0 %vm2133_vm0, %v2132_v0  ;;  %v146_v3 = vld [vmem:[#allocation2 + $0x8] sm:$0xff]  ;;  %vm158_vm1 = vcmask 130048   ;;  %v1912_v5 = vld [vmem:[%s2713_s3 + $0x4] ss:$12 sps:$4 sm:$0xff]   ;;  %v2134_v11 = vmov 0   ;;  %v150_v12 = vld [vmem:[#allocation6] sm:$0xff] }
  0x6e   :  { %1741 = vmatpush3.bf16.msra.mxu0 %v1911_v1  ;;  %v147_v4 = vpack.c.bf16 %v146_v3, %v145_v2  ;;  %266 = vmatprep.subr.bf16.mxu1 %v1912_v5  ;;  %v1914_v6 = vld [vmem:[%s2713_s3] ss:$12 sps:$4 sm:$0xff]   ;;  %v1915_v7 = vld [vmem:[%s2713_s3 + $0x8] ss:$12 sps:$4 sm:$0xff]   ;;  %v1918_v9 = vld [vmem:[%s2713_s3 + $0x18] ss:$12 sps:$4 sm:$0xff]  }
  0x6f   :  { %1746 = vmatprep.subr.bf16.mxu0 %v2132_v0  ;;  %267 = vmatpush1.bf16.msra.mxu1 %v1914_v6  ;;  %v1916_v8 = vld [vmem:[%s2713_s3 + $0x1c] ss:$12 sps:$4 sm:$0xff]   ;;  %v1919_v10 = vld [vmem:[%s2713_s3 + $0x20] ss:$12 sps:$4 sm:$0xff]   ;;  %vm262_vm2 = vcmask 261120   ;;  %v2335_v22 = vshrl.u32 %v350_v21, 7 }
  0x70   :  { %268 = vmatprep.subr.bf16.mxu1 %v1916_v8  ;;  %298 = vmatprep.mubr.bf16.mxu1 %v2134_v11  ;;  %v151_v14 = vld [vmem:[#allocation6 + $0x8] sm:$0xff]  ;;  %v2362_v33 = vld [vmem:[%s2720_s10 + $0x8] sm:$0xff]  ;;  %v2371_v43 = vld [vmem:[%s2720_s10 + $0x10] sm:$0xff]  ;;  %vm449_vm3 = vcmask 523264  }
  0x71   :  { %1743 = vmatmul.mubr.msk.bf16.vlgmr.msra.gmra.mrb[0].mxu0 %vm158_vm1, %v147_v4  ;;  %v2338_v23 = vsub.s32 1, %v2335_v22  ;;  %v2343_v24 = vld [vmem:[%s2717_s7] sm:$0xff]  ;;  %v2346_v25 = vsub.s32 0, %v2335_v22  ;;  %v2376_v44 = vld [vmem:[%s2720_s10 + $0x18] sm:$0xff]  ;;  %v2390_v53 = vld [vmem:[%s2720_s10 + $0x28] sm:$0xff] }
  0x72   :  { %1750 = vmatprep.mubr.msk.bf16.mxu0 %vm2133_vm0, %v2132_v0  ;;  %1747 = vmatpush3.bf16.msra.mxu0 %v1915_v7  ;;  %v2357_v30 = vld [vmem:[%s2720_s10] sm:$0xff]  ;;  %v2399_v58 = vld [vmem:[%s2720_s10 + $0x30] sm:$0xff]  ;;  %v2404_v59 = vld [vmem:[%s2720_s10 + $0x38] sm:$0xff] }
  0x73   :  { %1748 = vmatprep.subr.bf16.mxu0 %v2132_v0  ;;  %269 = vmatpush1.bf16.msra.mxu1 %v1918_v9  ;;  %v359_v26 = vrot.slane %v2343_v24, %v2338_v23  ;;  %v353_v28 = vrot.slane %v2343_v24, %v2346_v25  ;;  %v2385_v52 = vld [vmem:[%s2720_s10 + $0x20] sm:$0xff]  ;;  %v2417_v8 = vld [vmem:[#allocation10] sm:$0xff]   ;;  %v2421_v9 = vld [vmem:[#allocation10 + $0x8] sm:$0xff]  }
  0x74   :  { %1754 = vmatprep.subr.bf16.mxu1 %v2132_v0 }
  0x76   :  { %1749 = vmatpush3.bf16.msra.mxu0 %v1919_v10  ;;  %v2425_v10 = vld [vmem:[#allocation10 + $0x10] sm:$0xff]  }
  0x77   :  { %1766 = vmatprep.subr.bf16.mxu0 %v2132_v0 }
 0x144   :  { %v196_v13 = vpop.f32.mrb[0].mxu0 }
 0x145   :  { %v1744_v15 = vpop.f32.mrb[1].mxu0  ;;  %v2323_v17 = vadd.f32 %v196_v13, %v150_v12  ;;  %v2429_v12 = vld [vmem:[#allocation10 + $0x18] sm:$0xff]  }
 0x146   :  { %v199_v16 = vpop.f32.mrb[2].mxu0 }
 0x147   :  { %v2325_v18 = vadd.f32 %v199_v16, %v151_v14  ;;  %v1745_v19 = vpop.f32.mrb[3].mxu0 }
 0x149   :  { %v229_v20 = vpack.c.bf16 %v2325_v18, %v2323_v17 }
 0x14b   :  { %1605 = vmatmul.mubr.msk.bf16.vlgmr.msra.gmra.mrb[0].mxu1 %vm262_vm2, %v229_v20  ;;  %1751 = vmatmul.mubr.msk.bf16.vlgmr.msra.gmra.mrb[4].mxu0 %vm262_vm2, %v229_v20  ;;  %v364_v20 = vsub.s32 2, %v2335_v22 }
 0x14c   :  { %1762 = vmatprep.mubr.msk.bf16.mxu1 %vm2133_vm0, %v2132_v0  ;;  %1774 = vmatprep.mubr.msk.bf16.mxu0 %vm2133_vm0, %v2132_v0 }
 0x14d   :  { %1767 = vmatpush3.bf16.msra.mxu0 %v2417_v8 }
 0x14e   :  { %1768 = vmatprep.subr.bf16.mxu0 %v2132_v0 }
 0x151   :  { %1769 = vmatpush3.bf16.msra.mxu0 %v2421_v9 }
 0x152   :  { %1770 = vmatprep.subr.bf16.mxu0 %v2132_v0 }
 0x155   :  { %1771 = vmatpush3.bf16.msra.mxu0 %v2425_v10 }
 0x156   :  { %1772 = vmatprep.subr.bf16.mxu0 %v2132_v0 }
 0x159   :  { %1773 = vmatpush3.bf16.msra.mxu0 %v2429_v12 }
 0x15a   :  { %1778 = vmatprep.subr.bf16.mxu0 %v2132_v0 }
 0x21e   :  { %v300_v27 = vpop.f32.mrb[0].mxu1  ;;  %v2352_v29 = vpop.f32.mrb[4].mxu0 }
 0x21f   :  { %v302_v31 = vpop.f32.mrb[1].mxu1  ;;  %v1752_v32 = vpop.f32.mrb[5].mxu0  ;;  %v354_v39 = vadd.f32 %v353_v28, %v300_v27 }
 0x220   :  { %v360_v34 = vadd.f32 %v359_v26, %v302_v31  ;;  %v304_v35 = vpop.f32.mrb[2].mxu1  ;;  %v2364_v36 = vpop.f32.mrb[6].mxu0  ;;  %v2438_v31 = vld [vmem:[#allocation9] sm:$0xff]  ;;  %v2440_v32 = vld [vmem:[#allocation9 + $0x8] sm:$0xff] }
 0x221   :  { %v306_v37 = vpop.f32.mrb[3].mxu1  ;;  %v1753_v38 = vpop.f32.mrb[7].mxu0  ;;  %v355_v40 = vadd.f32 %v353_v28, %v304_v35 }
 0x222   :  { %v368_v41 = vmul.f32 %v360_v34, %v2357_v30  ;;  %v369_v42 = vmul.f32 %v360_v34, %v2362_v33  ;;  %v370_v48 = vmul.f32 %v360_v34, %v2371_v43  ;;  %v371_v49 = vmul.f32 %v360_v34, %v2376_v44 }
 0x223   :  { %v392_v45 = vpack.c.bf16 %v355_v40, %v354_v39  ;;  %v361_v50 = vadd.f32 %v359_v26, %v306_v37  ;;  %v365_v26 = vrot.slane %v2343_v24, %v364_v20 }
 0x224   :  { %v376_v46 = vpack.c.bf16 %v369_v42, %v368_v41  ;;  %v377_v51 = vpack.c.bf16 %v371_v49, %v370_v48 }
 0x225   :  { %v372_v55 = vmul.f32 %v361_v50, %v2385_v52  ;;  %v373_v56 = vmul.f32 %v361_v50, %v2390_v53  ;;  %v374_v61 = vmul.f32 %v361_v50, %v2399_v58  ;;  %v375_v62 = vmul.f32 %v361_v50, %v2404_v59 }
 0x226   :  { %v397_v47 = vsel %vm262_vm2, %v376_v46, 0  ;;  %v400_v54 = vsel %vm262_vm2, %v377_v51, 0  ;;  %v366_v27 = vadd.f32 %v365_v26, %v2352_v29  ;;  %v367_v29 = vadd.f32 %v365_v26, %v2364_v36 }
 0x227   :  { %1755 = vmatpush3.bf16.xpose.msra.mxu1 %v397_v47  ;;  %v378_v57 = vpack.c.bf16 %v373_v56, %v372_v55  ;;  %v379_v63 = vpack.c.bf16 %v375_v62, %v374_v61 }
 0x228   :  { %1756 = vmatprep.subr.bf16.mxu1 %v2132_v0  ;;  %v380_v35 = vmul.f32 %v366_v27, %v2357_v30  ;;  %v381_v37 = vmul.f32 %v366_v27, %v2362_v33  ;;  %v382_v41 = vmul.f32 %v366_v27, %v2371_v43  ;;  %v383_v42 = vmul.f32 %v366_v27, %v2376_v44 }
 0x229   :  { %v403_v60 = vsel %vm262_vm2, %v378_v57, 0  ;;  %v406_v1 = vsel %vm262_vm2, %v379_v63, 0  ;;  %v384_v46 = vmul.f32 %v367_v29, %v2385_v52  ;;  %v385_v47 = vmul.f32 %v367_v29, %v2390_v53 }
 0x22a   :  { %v389_v48 = vpack.c.bf16 %v383_v42, %v382_v41  ;;  %v386_v49 = vmul.f32 %v367_v29, %v2399_v58  ;;  %v387_v36 = vmul.f32 %v367_v29, %v2404_v59  ;;  %v1928_v29 = vld [vmem:[%s2716_s6] sm:$0xff]  }
 0x22b   :  { %v390_v50 = vpack.c.bf16 %v385_v47, %v384_v46 }
 0x22c   :  { %v391_v51 = vpack.c.bf16 %v387_v36, %v386_v49 }
 0x22f   :  { %1757 = vmatpush3.bf16.xpose.msra.mxu1 %v400_v54  ;;  %v1924_v54 = vld [vmem:[%s2714_s4] sm:$0xff]  }
 0x230   :  { %1758 = vmatprep.subr.bf16.mxu1 %v2132_v0 }
 0x237   :  { %1759 = vmatpush3.bf16.xpose.msra.mxu1 %v403_v60 }
 0x238   :  { %1760 = vmatprep.subr.bf16.mxu1 %v2132_v0 }
 0x23f   :  { %1761 = vmatpush3.bf16.xpose.msra.mxu1 %v406_v1 }
 0x240   :  { %1790 = vmatprep.subr.bf16.mxu1 %v2132_v0 }
 0x246   :  { %1763 = vmatmul.mubr.msk.bf16.vlgmr.msra.gmra.mrb[4].mxu1 %vm262_vm2, %v392_v45  ;;  %v388_v45 = vpack.c.bf16 %v381_v37, %v380_v35 }
 0x247   :  { %1794 = vmatprep.mubr.msk.bf16.mxu1 %vm2133_vm0, %v2132_v0  ;;  %1791 = vmatpush3.bf16.msra.mxu1 %v1924_v54 }
 0x248   :  { %1792 = vmatprep.subr.bf16.mxu1 %v2132_v0 }
 0x319   :  { %v442_v2 = vpop.f32.mrb[4].mxu1 }
 0x31a   :  { %v1764_v3 = vpop.f32.mrb[5].mxu1  ;;  %v450_v4 = vsel %vm449_vm3, %v442_v2, -inf }
 0x31b   :  { %451 = vmax.xlane.f32.xlu0 %v450_v4  ;;  %v445_v5 = vpop.f32.mrb[6].mxu1  ;;  %v1925_v3 = vld [vmem:[%s2714_s4 + $0x8] sm:$0xff]  }
 0x31c   :  { %v1765_v6 = vpop.f32.mrb[7].mxu1  ;;  %v453_v7 = vsel %vm449_vm3, %v445_v5, -inf  ;;  %1793 = vmatpush3.bf16.msra.mxu1 %v1925_v3 }
 0x31d   :  { %1806 = vmatprep.subr.bf16.mxu1 %v2132_v0 }
 0x31f   :  { %454 = vmax.xlane.f32.xlu0 %v453_v7 }
 0x3a8   :  { %v452_v13 = vpop.xlane.xlu0 %451 }
 0x3a9   :  { %v456_v14 = vsub.f32 %v442_v2, %v452_v13 }
 0x3ab   :  { %v458_v15 = vmul.f32 1.442695, %v456_v14  ;;  %v585_v14 = vsub.s32 3, %v2335_v22 }
 0x3ac   :  { %v455_v16 = vpop.xlane.xlu0 %454 }
 0x3ad   :  { %v457_v19 = vsub.f32 %v445_v5, %v455_v16  ;;  %1950 = vpow2.f32 %v458_v15  ;;  %v586_v15 = vrot.slane %v2343_v24, %v585_v14 }
 0x3af   :  { %v460_v21 = vmul.f32 1.442695, %v457_v19 }
 0x3b1   :  { %1952 = vpow2.f32 %v460_v21 }
 0x3b7   :  { %v1951_v28 = vpop.eup %1950 }
 0x3b8   :  { %v462_v38 = vmul.f32 %v1951_v28, %v2438_v31 }
 0x3bb   :  { %v1953_v34 = vpop.eup %1952 }
 0x3bc   :  { %v463_v39 = vmul.f32 %v1953_v34, %v2440_v32 }
 0x3be   :  { %v464_v40 = vpack.c.bf16 %v463_v39, %v462_v38 }
 0x3c0   :  { %1775 = vmatmul.mubr.msk.bf16.vlgmr.msra.gmra.mrb[8].mxu0 %vm449_vm3, %v464_v40 }
 0x3c1   :  { %1779 = vmatpush3.bf16.msra.mxu0 %v388_v45  ;;  %1786 = vmatprep.mubr.msk.bf16.mxu0 %vm2133_vm0, %v2132_v0  ;;  %v1929_v45 = vld [vmem:[%s2716_s6 + $0x8] sm:$0xff]  }
 0x3c2   :  { %1780 = vmatprep.subr.bf16.mxu0 %v2132_v0 }
 0x3c5   :  { %1781 = vmatpush3.bf16.msra.mxu0 %v389_v48 }
 0x3c6   :  { %1782 = vmatprep.subr.bf16.mxu0 %v2132_v0 }
 0x3c9   :  { %1783 = vmatpush3.bf16.msra.mxu0 %v390_v50 }
 0x3ca   :  { %1784 = vmatprep.subr.bf16.mxu0 %v2132_v0 }
 0x3cd   :  { %1785 = vmatpush3.bf16.msra.mxu0 %v391_v51 }
 0x3ce   :  { %1798 = vmatprep.subr.bf16.mxu0 %v2132_v0 }
 0x493   :  { %v526_v55 = vpop.f32.mrb[8].mxu0 }
 0x494   :  { %1954 = vrcp.f32 %v526_v55  ;;  %v1776_v56 = vpop.f32.mrb[9].mxu0 }
 0x495   :  { %v529_v57 = vpop.f32.mrb[10].mxu0 }
 0x496   :  { %1956 = vrcp.f32 %v529_v57  ;;  %v1777_v60 = vpop.f32.mrb[11].mxu0 }
 0x49e   :  { %v1955_v61 = vpop.eup %1954 }
 0x49f   :  { %v535_v63 = vmul.f32 %v1955_v61, %v462_v38 }
 0x4a0   :  { %v1957_v62 = vpop.eup %1956 }
 0x4a1   :  { %v536_v1 = vmul.f32 %v1957_v62, %v463_v39 }
 0x4a3   :  { %v537_v2 = vpack.c.bf16 %v536_v1, %v535_v63 }
 0x4a5   :  { %1787 = vmatmul.mubr.msk.bf16.vlgmr.msra.gmra.mrb[12].mxu0 %vm449_vm3, %v537_v2  ;;  %v680_v2 = vsub.s32 4, %v2335_v22 }
 0x4a6   :  { %1802 = vmatprep.mubr.msk.bf16.mxu0 %vm2133_vm0, %v2132_v0 }
 0x578   :  { %v575_v4 = vpop.f32.mrb[12].mxu0 }
 0x579   :  { %v1788_v5 = vpop.f32.mrb[13].mxu0 }
 0x57a   :  { %v578_v6 = vpop.f32.mrb[14].mxu0 }
 0x57b   :  { %v582_v7 = vpack.c.bf16 %v578_v6, %v575_v4  ;;  %v1789_v13 = vpop.f32.mrb[15].mxu0  ;;  %v681_v6 = vrot.slane %v2343_v24, %v680_v2 }
 0x57d   :  { %1795 = vmatmul.mubr.msk.bf16.vlgmr.msra.gmra.mrb[8].mxu1 %vm262_vm2, %v582_v7  ;;  %v686_v7 = vsub.s32 5, %v2335_v22 }
 0x57e   :  { %1814 = vmatprep.mubr.msk.bf16.mxu1 %vm2133_vm0, %v2132_v0  ;;  %1807 = vmatpush3.bf16.msra.mxu1 %v1928_v29 }
 0x57f   :  { %1808 = vmatprep.subr.bf16.mxu1 %v2132_v0 }
 0x582   :  { %1809 = vmatpush3.bf16.msra.mxu1 %v1929_v45 }
 0x583   :  { %1810 = vmatprep.subr.bf16.mxu1 %v2132_v0 }
 0x650   :  { %v636_v16 = vpop.f32.mrb[8].mxu1 }
 0x651   :  { %v637_v19 = vadd.f32 %v636_v16, %v586_v15  ;;  %v1796_v21 = vpop.f32.mrb[9].mxu1 }
 0x652   :  { %v639_v26 = vpop.f32.mrb[10].mxu1  ;;  %v687_v21 = vrot.slane %v2343_v24, %v686_v7 }
 0x653   :  { %v643_v27 = vadd.f32 %v637_v19, %v2323_v17  ;;  %v640_v28 = vadd.f32 %v639_v26, %v586_v15  ;;  %v1797_v34 = vpop.f32.mrb[11].mxu1  ;;  %v1926_v17 = vld [vmem:[%s2715_s5] sm:$0xff]  }
 0x654   :  { %1799 = vmatpush3.bf16.msra.mxu0 %v1926_v17 }
 0x655   :  { %v644_v35 = vadd.f32 %v640_v28, %v2325_v18  ;;  %v645_v37 = vsel %vm262_vm2, %v643_v27, 0.0  ;;  %v654_v38 = vmul.f32 %v643_v27, %v643_v27  ;;  %v1927_v18 = vld [vmem:[%s2715_s5 + $0x8] sm:$0xff]   ;;  %1800 = vmatprep.subr.bf16.mxu0 %v2132_v0 }
 0x656   :  { %646 = vadd.xlane.f32.xlu1 %v645_v37 }
 0x657   :  { %v656_v39 = vsel %vm262_vm2, %v654_v38, 0.0  ;;  %v648_v40 = vsel %vm262_vm2, %v644_v35, 0.0  ;;  %v655_v41 = vmul.f32 %v644_v35, %v644_v35  ;;  %v693_v38 = vsub.s32 6, %v2335_v22 }
 0x658   :  { %657 = vadd.xlane.f32.xlu0 %v656_v39  ;;  %1801 = vmatpush3.bf16.msra.mxu0 %v1927_v18 }
 0x659   :  { %v659_v42 = vsel %vm262_vm2, %v655_v41, 0.0 }
 0x65a   :  { %649 = vadd.xlane.f32.xlu1 %v648_v40 }
 0x65e   :  { %660 = vadd.xlane.f32.xlu1 %v659_v42 }
 0x6e3   :  { %v647_v46 = vpop.xlane.xlu1 %646 }
 0x6e4   :  { %v652_v47 = vmul.f32 0.03125, %v647_v46 }
 0x6e5   :  { %v658_v48 = vpop.xlane.xlu0 %657 }
 0x6e6   :  { %v664_v49 = vmul.f32 %v652_v47, %v652_v47  ;;  %v662_v36 = vmul.f32 0.03125, %v658_v48  ;;  %v674_v4 = vsub.f32 %v643_v27, %v652_v47  ;;  %v1930_v27 = vld [vmem:[%s2716_s6 + $0x10] sm:$0xff]   ;;  %v756_v47 = vsub.s32 7, %v2335_v22 }
 0x6e7   :  { %v650_v50 = vpop.xlane.xlu1 %649  ;;  %1811 = vmatpush3.bf16.msra.mxu1 %v1930_v27 }
 0x6e8   :  { %v666_v51 = vsub.f32 %v662_v36, %v664_v49  ;;  %v653_v54 = vmul.f32 0.03125, %v650_v50  ;;  %1812 = vmatprep.subr.bf16.mxu1 %v2132_v0  ;;  %v757_v48 = vrot.slane %v2343_v24, %v756_v47 }
 0x6ea   :  { %v668_v55 = vmax.f32 %v666_v51, 0.0  ;;  %v665_v60 = vmul.f32 %v653_v54, %v653_v54  ;;  %v675_v13 = vsub.f32 %v644_v35, %v653_v54  ;;  %v1931_v35 = vld [vmem:[%s2716_s6 + $0x18] sm:$0xff]  }
 0x6eb   :  { %v661_v56 = vpop.xlane.xlu1 %660  ;;  %1813 = vmatpush3.bf16.msra.mxu1 %v1931_v35 }
 0x6ec   :  { %v670_v57 = vadd.f32 1e-05, %v668_v55  ;;  %v663_v61 = vmul.f32 0.03125, %v661_v56  ;;  %1826 = vmatprep.subr.bf16.mxu1 %v2132_v0 }
 0x6ee   :  { %1958 = vrsqrt.f32 %v670_v57  ;;  %v667_v62 = vsub.f32 %v663_v61, %v665_v60 }
 0x6f0   :  { %v669_v63 = vmax.f32 %v667_v62, 0.0 }
 0x6f2   :  { %v671_v1 = vadd.f32 1e-05, %v669_v63 }
 0x6f4   :  { %1960 = vrsqrt.f32 %v671_v1 }
 0x6f8   :  { %v1959_v3 = vpop.eup %1958 }
 0x6f9   :  { %v676_v5 = vmul.f32 %v1959_v3, %v674_v4  ;;  %v1932_v3 = vld [vmem:[%s2713_s3 + $0x30] ss:$12 sps:$4 sm:$0xff]   ;;  %v1934_v4 = vld [vmem:[%s2713_s3 + $0x34] ss:$12 sps:$4 sm:$0xff]  }
 0x6fa   :  { %939 = vmatprep.subr.bf16.mxu0 %v1934_v4 }
 0x6fb   :  { %v682_v19 = vmul.f32 %v681_v6, %v676_v5  ;;  %v1937_v5 = vld [vmem:[%s2713_s3 + $0x4c] ss:$12 sps:$4 sm:$0xff]  }
 0x6fd   :  { %v688_v28 = vadd.f32 %v687_v21, %v682_v19 }
 0x6fe   :  { %v1961_v15 = vpop.eup %1960 }
 0x6ff   :  { %v677_v16 = vmul.f32 %v1961_v15, %v675_v13 }
 0x701   :  { %v683_v26 = vmul.f32 %v681_v6, %v677_v16  ;;  %v1935_v6 = vld [vmem:[%s2713_s3 + $0x48] ss:$12 sps:$4 sm:$0xff]  }
 0x703   :  { %v689_v34 = vadd.f32 %v687_v21, %v683_v26 }
 0x705   :  { %v690_v37 = vpack.c.bf16 %v689_v34, %v688_v28 }
 0x707   :  { %1803 = vmatmul.mubr.msk.bf16.vlgmr.msra.gmra.mrb[16].mxu0 %vm262_vm2, %v690_v37 }
 0x708   :  { %971 = vmatprep.mubr.bf16.mxu0 %v2134_v11  ;;  %v694_v11 = vrot.slane %v2343_v24, %v693_v38  ;;  %940 = vmatpush1.bf16.msra.mxu0 %v1932_v3 }
 0x709   :  { %941 = vmatprep.subr.bf16.mxu0 %v1937_v5 }
 0x70c   :  { %942 = vmatpush1.bf16.msra.mxu0 %v1935_v6 }
 0x70d   :  { %1818 = vmatprep.subr.bf16.mxu0 %v2132_v0 }
 0x7da   :  { %v744_v39 = vpop.f32.mrb[16].mxu0 }
 0x7db   :  { %v745_v40 = vadd.f32 %v744_v39, %v694_v11  ;;  %v1804_v41 = vpop.f32.mrb[17].mxu0 }
 0x7dc   :  { %v747_v42 = vpop.f32.mrb[18].mxu0 }
 0x7dd   :  { %v748_v17 = vadd.f32 %v747_v42, %v694_v11  ;;  %v1805_v18 = vpop.f32.mrb[19].mxu0  ;;  %v751_v29 = vmax.f32 %v745_v40, 0.0 }
 0x7df   :  { %v752_v45 = vmax.f32 %v748_v17, 0.0  ;;  %v228_v17 = vld [vmem:[%s2717_s7 + $0x8] sm:$0xff] }
 0x7e1   :  { %v753_v46 = vpack.c.bf16 %v752_v45, %v751_v29  ;;  %v863_v29 = vrot.slane %v228_v17, %v2346_v25 }
 0x7e3   :  { %1815 = vmatmul.mubr.msk.bf16.vlgmr.msra.gmra.mrb[12].mxu1 %vm449_vm3, %v753_v46 }
 0x7e4   :  { %1834 = vmatprep.mubr.msk.bf16.mxu1 %vm2133_vm0, %v2132_v0 }
 0x8b6   :  { %v819_v49 = vpop.f32.mrb[12].mxu1 }
 0x8b7   :  { %v820_v36 = vadd.f32 %v819_v49, %v757_v48  ;;  %v1816_v50 = vpop.f32.mrb[13].mxu1 }
 0x8b8   :  { %v822_v51 = vpop.f32.mrb[14].mxu1 }
 0x8b9   :  { %v826_v54 = vadd.f32 %v820_v36, %v688_v28  ;;  %v823_v55 = vadd.f32 %v822_v51, %v757_v48  ;;  %v1817_v56 = vpop.f32.mrb[15].mxu1  ;;  %v869_v51 = vrot.slane %v228_v17, %v2338_v23 }
 0x8bb   :  { %v827_v57 = vadd.f32 %v823_v55, %v689_v34  ;;  %v828_v60 = vsel %vm262_vm2, %v826_v54, 0.0  ;;  %v836_v61 = vmul.f32 %v826_v54, %v826_v54 }
 0x8bc   :  { %829 = vadd.xlane.f32.xlu0 %v828_v60 }
 0x8bd   :  { %v831_v62 = vsel %vm262_vm2, %v827_v57, 0.0  ;;  %v837_v63 = vmul.f32 %v827_v57, %v827_v57  ;;  %v838_v1 = vsel %vm262_vm2, %v836_v61, 0.0  ;;  %v1938_v61 = vld [vmem:[%s2713_s3 + $0x38] ss:$12 sps:$4 sm:$0xff]  }
 0x8be   :  { %832 = vadd.xlane.f32.xlu1 %v831_v62 }
 0x8bf   :  { %v841_v24 = vsel %vm262_vm2, %v837_v63, 0.0 }
 0x8c0   :  { %839 = vadd.xlane.f32.xlu0 %v838_v1 }
 0x8c2   :  { %842 = vadd.xlane.f32.xlu1 %v841_v24 }
 0x949   :  { %v830_v13 = vpop.xlane.xlu0 %829 }
 0x94a   :  { %v834_v15 = vmul.f32 0.03125, %v830_v13 }
 0x94b   :  { %v833_v16 = vpop.xlane.xlu1 %832 }
 0x94c   :  { %v835_v19 = vmul.f32 0.03125, %v833_v16  ;;  %v846_v26 = vmul.f32 %v834_v15, %v834_v15  ;;  %v856_v18 = vsub.f32 %v826_v54, %v834_v15 }
 0x94d   :  { %v840_v21 = vpop.xlane.xlu0 %839 }
 0x94e   :  { %v844_v28 = vmul.f32 0.03125, %v840_v21  ;;  %v847_v37 = vmul.f32 %v835_v19, %v835_v19  ;;  %v857_v46 = vsub.f32 %v827_v57, %v835_v19  ;;  %v1939_v57 = vld [vmem:[%s2713_s3 + $0x50] ss:$12 sps:$4 sm:$0xff]  }
 0x94f   :  { %v843_v34 = vpop.xlane.xlu1 %842 }
 0x950   :  { %v848_v27 = vsub.f32 %v844_v28, %v846_v26  ;;  %v845_v35 = vmul.f32 0.03125, %v843_v34 }
 0x952   :  { %v850_v11 = vmax.f32 %v848_v27, 0.0  ;;  %v849_v39 = vsub.f32 %v845_v35, %v847_v37 }
 0x954   :  { %v852_v40 = vadd.f32 1e-05, %v850_v11  ;;  %v851_v41 = vmax.f32 %v849_v39, 0.0 }
 0x956   :  { %1962 = vrsqrt.f32 %v852_v40  ;;  %v853_v42 = vadd.f32 1e-05, %v851_v41 }
 0x958   :  { %1964 = vrsqrt.f32 %v853_v42 }
 0x960   :  { %v1963_v45 = vpop.eup %1962 }
 0x961   :  { %v858_v48 = vmul.f32 %v1963_v45, %v856_v18 }
 0x962   :  { %v1965_v49 = vpop.eup %1964 }
 0x963   :  { %v859_v36 = vmul.f32 %v1965_v49, %v857_v46  ;;  %v864_v50 = vmul.f32 %v863_v29, %v858_v48 }
 0x965   :  { %v865_v55 = vmul.f32 %v863_v29, %v859_v36  ;;  %v2550_v56 = vadd.f32 %v869_v51, %v864_v50 }
 0x967   :  { %v2552_v60 = vadd.f32 %v869_v51, %v865_v55 }
 0x969   :  { %v903_v54 = vpack.c.bf16 %v2552_v60, %v2550_v56 }
 0x96b   :  { %1657 = vmatmul.mubr.msk.bf16.vlgmr.msra.gmra.mrb[20].mxu0 %vm262_vm2, %v903_v54 }
 0x96c   :  { %1819 = vmatpush3.bf16.msra.mxu0 %v1938_v61  ;;  %1822 = vmatprep.mubr.msk.bf16.mxu0 %vm2133_vm0, %v2132_v0 }
 0x96d   :  { %1820 = vmatprep.subr.bf16.mxu0 %v2132_v0 }
 0x970   :  { %1821 = vmatpush3.bf16.msra.mxu0 %v1939_v57 }
 0x971   :  { %1838 = vmatprep.subr.bf16.mxu0 %v2132_v0 }
 0x973   :  { %1823 = vmatmul.mubr.msk.bf16.vlgmr.msra.gmra.mrb[24].mxu0 %vm262_vm2, %v903_v54 }
 0x974   :  { %1839 = vmatpush3.bf16.msra.mxu0 %v2417_v8  ;;  %1846 = vmatprep.mubr.msk.bf16.mxu0 %vm2133_vm0, %v2132_v0  ;;  %v2581_v8 = vld [vmem:[%s2717_s7 + $0x10] sm:$0xff] }
 0x975   :  { %1840 = vmatprep.subr.bf16.mxu0 %v2132_v0  ;;  %v1032_v62 = vrot.slane %v2581_v8, %v2338_v23 }
 0x978   :  { %1841 = vmatpush3.bf16.msra.mxu0 %v2421_v9  ;;  %v1026_v9 = vrot.slane %v2581_v8, %v2346_v25 }
 0x979   :  { %1842 = vmatprep.subr.bf16.mxu0 %v2132_v0 }
 0x97c   :  { %1843 = vmatpush3.bf16.msra.mxu0 %v2425_v10 }
 0x97d   :  { %1844 = vmatprep.subr.bf16.mxu0 %v2132_v0 }
 0x980   :  { %1845 = vmatpush3.bf16.msra.mxu0 %v2429_v12 }
 0x981   :  { %1850 = vmatprep.subr.bf16.mxu0 %v2132_v0 }
 0xa3e   :  { %v973_v63 = vpop.f32.mrb[20].mxu0 }
 0xa3f   :  { %v975_v1 = vpop.f32.mrb[21].mxu0  ;;  %v1027_v3 = vadd.f32 %v1026_v9, %v973_v63  ;;  %v1038_v63 = vrot.slane %v2581_v8, %v364_v20 }
 0xa40   :  { %v1033_v10 = vadd.f32 %v1032_v62, %v975_v1  ;;  %v977_v24 = vpop.f32.mrb[22].mxu0 }
 0xa41   :  { %v1028_v4 = vadd.f32 %v1026_v9, %v977_v24  ;;  %v979_v12 = vpop.f32.mrb[23].mxu0 }
 0xa42   :  { %v1041_v5 = vmul.f32 %v1033_v10, %v2357_v30  ;;  %v1042_v6 = vmul.f32 %v1033_v10, %v2362_v33  ;;  %v1043_v21 = vmul.f32 %v1033_v10, %v2371_v43  ;;  %v1044_v26 = vmul.f32 %v1033_v10, %v2376_v44 }
 0xa43   :  { %v1065_v13 = vpack.c.bf16 %v1028_v4, %v1027_v3  ;;  %v1034_v27 = vadd.f32 %v1032_v62, %v979_v12 }
 0xa44   :  { %v1049_v15 = vpack.c.bf16 %v1042_v6, %v1041_v5  ;;  %v1050_v35 = vpack.c.bf16 %v1044_v26, %v1043_v21 }
 0xa45   :  { %v1045_v39 = vmul.f32 %v1034_v27, %v2385_v52  ;;  %v1046_v40 = vmul.f32 %v1034_v27, %v2390_v53  ;;  %v1047_v17 = vmul.f32 %v1034_v27, %v2399_v58  ;;  %v1048_v18 = vmul.f32 %v1034_v27, %v2404_v59 }
 0xa46   :  { %v1016_v16 = vpop.f32.mrb[24].mxu0  ;;  %v1070_v19 = vsel %vm262_vm2, %v1049_v15, 0  ;;  %v1073_v11 = vsel %vm262_vm2, %v1050_v35, 0  ;;  %v1941_v35 = vld [vmem:[%s2714_s4 + $0x18] sm:$0xff]  }
 0xa47   :  { %v1824_v28 = vpop.f32.mrb[25].mxu0  ;;  %1827 = vmatpush3.bf16.xpose.msra.mxu1 %v1070_v19  ;;  %v1051_v41 = vpack.c.bf16 %v1046_v40, %v1045_v39  ;;  %v1052_v29 = vpack.c.bf16 %v1048_v18, %v1047_v17  ;;  %v1039_v1 = vadd.f32 %v1038_v63, %v1016_v16  ;;  %v1234_v17 = vrot.slane %v2581_v8, %v585_v14 }
 0xa48   :  { %v1019_v34 = vpop.f32.mrb[26].mxu0  ;;  %1828 = vmatprep.subr.bf16.mxu1 %v2132_v0 }
 0xa49   :  { %v1825_v37 = vpop.f32.mrb[27].mxu0  ;;  %v1076_v42 = vsel %vm262_vm2, %v1051_v41, 0  ;;  %v1079_v45 = vsel %vm262_vm2, %v1052_v29, 0  ;;  %v1053_v3 = vmul.f32 %v1039_v1, %v2357_v30  ;;  %v1054_v4 = vmul.f32 %v1039_v1, %v2362_v33 }
 0xa4a   :  { %v1056_v15 = vmul.f32 %v1039_v1, %v2376_v44  ;;  %v1040_v19 = vadd.f32 %v1038_v63, %v1019_v34 }
 0xa4b   :  { %v1061_v21 = vpack.c.bf16 %v1054_v4, %v1053_v3 }
 0xa4c   :  { %v1057_v30 = vmul.f32 %v1040_v19, %v2385_v52  ;;  %v1058_v33 = vmul.f32 %v1040_v19, %v2390_v53  ;;  %v1060_v44 = vmul.f32 %v1040_v19, %v2404_v59  ;;  %v1940_v52 = vld [vmem:[%s2714_s4 + $0x10] sm:$0xff]  }
 0xa4f   :  { %1829 = vmatpush3.bf16.xpose.msra.mxu1 %v1073_v11 }
 0xa50   :  { %1830 = vmatprep.subr.bf16.mxu1 %v2132_v0 }
 0xa57   :  { %1831 = vmatpush3.bf16.xpose.msra.mxu1 %v1076_v42 }
 0xa58   :  { %1832 = vmatprep.subr.bf16.mxu1 %v2132_v0 }
 0xa5f   :  { %1833 = vmatpush3.bf16.xpose.msra.mxu1 %v1079_v45 }
 0xa60   :  { %1862 = vmatprep.subr.bf16.mxu1 %v2132_v0 }
 0xa66   :  { %1835 = vmatmul.mubr.msk.bf16.vlgmr.msra.gmra.mrb[16].mxu1 %vm262_vm2, %v1065_v13  ;;  %v1055_v13 = vmul.f32 %v1039_v1, %v2371_v43  ;;  %v1059_v43 = vmul.f32 %v1040_v19, %v2399_v58 }
 0xa67   :  { %1866 = vmatprep.mubr.msk.bf16.mxu1 %vm2133_vm0, %v2132_v0  ;;  %1863 = vmatpush3.bf16.msra.mxu1 %v1940_v52 }
 0xa68   :  { %v1062_v20 = vpack.c.bf16 %v1056_v15, %v1055_v13  ;;  %1864 = vmatprep.subr.bf16.mxu1 %v2132_v0 }
 0xa6b   :  { %1865 = vmatpush3.bf16.msra.mxu1 %v1941_v35 }
 0xa6c   :  { %1878 = vmatprep.subr.bf16.mxu1 %v2132_v0 }
 0xb39   :  { %v1115_v46 = vpop.f32.mrb[16].mxu1 }
 0xb3a   :  { %v1836_v48 = vpop.f32.mrb[17].mxu1  ;;  %v1122_v49 = vsel %vm449_vm3, %v1115_v46, -inf }
 0xb3b   :  { %1123 = vmax.xlane.f32.xlu0 %v1122_v49  ;;  %v1118_v36 = vpop.f32.mrb[18].mxu1 }
 0xb3c   :  { %v1837_v50 = vpop.f32.mrb[19].mxu1  ;;  %v1125_v51 = vsel %vm449_vm3, %v1118_v36, -inf }
 0xb3d   :  { %1126 = vmax.xlane.f32.xlu1 %v1125_v51 }
 0xbc8   :  { %v1124_v55 = vpop.xlane.xlu0 %1123 }
 0xbc9   :  { %v1128_v61 = vsub.f32 %v1115_v46, %v1124_v55 }
 0xbca   :  { %v1127_v54 = vpop.xlane.xlu1 %1126 }
 0xbcb   :  { %v1130_v57 = vmul.f32 1.442695, %v1128_v61  ;;  %v1129_v62 = vsub.f32 %v1118_v36, %v1127_v54 }
 0xbcd   :  { %1966 = vpow2.f32 %v1130_v57  ;;  %v1132_v9 = vmul.f32 1.442695, %v1129_v62  ;;  %v1944_v62 = vld [vmem:[%s2716_s6 + $0x20] sm:$0xff]  }
 0xbcf   :  { %1968 = vpow2.f32 %v1132_v9  ;;  %v1945_v9 = vld [vmem:[%s2716_s6 + $0x28] sm:$0xff]  }
 0xbd7   :  { %v1967_v10 = vpop.eup %1966 }
 0xbd8   :  { %v1134_v12 = vmul.f32 %v1967_v10, %v2438_v31  ;;  %v1063_v31 = vpack.c.bf16 %v1058_v33, %v1057_v30 }
 0xbd9   :  { %v1969_v24 = vpop.eup %1968 }
 0xbda   :  { %v1135_v5 = vmul.f32 %v1969_v24, %v2440_v32  ;;  %v1064_v32 = vpack.c.bf16 %v1060_v44, %v1059_v43  ;;  %v1328_v44 = vrot.slane %v2581_v8, %v680_v2  ;;  %v1946_v2 = vld [vmem:[%s2716_s6 + $0x30] sm:$0xff]  }
 0xbdc   :  { %v1136_v6 = vpack.c.bf16 %v1135_v5, %v1134_v12 }
 0xbde   :  { %1847 = vmatmul.mubr.msk.bf16.vlgmr.msra.gmra.mrb[28].mxu0 %vm449_vm3, %v1136_v6 }
 0xbdf   :  { %1851 = vmatpush3.bf16.msra.mxu0 %v1061_v21  ;;  %1858 = vmatprep.mubr.msk.bf16.mxu0 %vm2133_vm0, %v2132_v0 }
 0xbe0   :  { %1852 = vmatprep.subr.bf16.mxu0 %v2132_v0 }
 0xbe3   :  { %1853 = vmatpush3.bf16.msra.mxu0 %v1062_v20 }
 0xbe4   :  { %1854 = vmatprep.subr.bf16.mxu0 %v2132_v0 }
 0xbe7   :  { %1855 = vmatpush3.bf16.msra.mxu0 %v1063_v31 }
 0xbe8   :  { %1856 = vmatprep.subr.bf16.mxu0 %v2132_v0 }
 0xbeb   :  { %1857 = vmatpush3.bf16.msra.mxu0 %v1064_v32 }
 0xbec   :  { %1870 = vmatprep.subr.bf16.mxu0 %v2132_v0 }
 0xcb1   :  { %v1174_v53 = vpop.f32.mrb[28].mxu0 }
 0xcb2   :  { %1970 = vrcp.f32 %v1174_v53  ;;  %v1848_v58 = vpop.f32.mrb[29].mxu0 }
 0xcb3   :  { %v1177_v16 = vpop.f32.mrb[30].mxu0 }
 0xcb4   :  { %1972 = vrcp.f32 %v1177_v16  ;;  %v1849_v59 = vpop.f32.mrb[31].mxu0 }
 0xcb5   :  { %v1334_v59 = vrot.slane %v2581_v8, %v686_v7  ;;  %v1947_v7 = vld [vmem:[%s2716_s6 + $0x38] sm:$0xff]  }
 0xcbc   :  { %v1971_v26 = vpop.eup %1970 }
 0xcbd   :  { %v1183_v34 = vmul.f32 %v1971_v26, %v1134_v12 }
 0xcbe   :  { %v1973_v28 = vpop.eup %1972 }
 0xcbf   :  { %v1184_v37 = vmul.f32 %v1973_v28, %v1135_v5 }
 0xcc1   :  { %v1185_v27 = vpack.c.bf16 %v1184_v37, %v1183_v34 }
 0xcc3   :  { %1859 = vmatmul.mubr.msk.bf16.vlgmr.msra.gmra.mrb[32].mxu0 %vm449_vm3, %v1185_v27  ;;  %v1341_v27 = vrot.slane %v2581_v8, %v693_v38 }
 0xcc4   :  { %1874 = vmatprep.mubr.msk.bf16.mxu0 %vm2133_vm0, %v2132_v0 }
 0xd96   :  { %v1223_v11 = vpop.f32.mrb[32].mxu0 }
 0xd97   :  { %v1860_v39 = vpop.f32.mrb[33].mxu0 }
 0xd98   :  { %v1226_v40 = vpop.f32.mrb[34].mxu0 }
 0xd99   :  { %v1230_v41 = vpack.c.bf16 %v1226_v40, %v1223_v11  ;;  %v1861_v42 = vpop.f32.mrb[35].mxu0 }
 0xd9b   :  { %1867 = vmatmul.mubr.msk.bf16.vlgmr.msra.gmra.mrb[20].mxu1 %vm262_vm2, %v1230_v41 }
 0xd9c   :  { %1886 = vmatprep.mubr.msk.bf16.mxu1 %vm2133_vm0, %v2132_v0  ;;  %1879 = vmatpush3.bf16.msra.mxu1 %v1944_v62 }
 0xd9d   :  { %1880 = vmatprep.subr.bf16.mxu1 %v2132_v0 }
 0xda0   :  { %1881 = vmatpush3.bf16.msra.mxu1 %v1945_v9 }
 0xda1   :  { %1882 = vmatprep.subr.bf16.mxu1 %v2132_v0 }
 0xda4   :  { %1883 = vmatpush3.bf16.msra.mxu1 %v1946_v2 }
 0xda5   :  { %1884 = vmatprep.subr.bf16.mxu1 %v2132_v0 }
 0xda8   :  { %1885 = vmatpush3.bf16.msra.mxu1 %v1947_v7 }
 0xe6e   :  { %v1284_v18 = vpop.f32.mrb[20].mxu1 }
 0xe6f   :  { %v1285_v29 = vadd.f32 %v1284_v18, %v1234_v17  ;;  %v1868_v45 = vpop.f32.mrb[21].mxu1 }
 0xe70   :  { %v1287_v46 = vpop.f32.mrb[22].mxu1  ;;  %v1404_v45 = vrot.slane %v2581_v8, %v756_v47  ;;  %v1948_v8 = vld [vmem:[#allocation7] sm:$0xff]  }
 0xe71   :  { %v1291_v48 = vadd.f32 %v1285_v29, %v2550_v56  ;;  %v1288_v49 = vadd.f32 %v1287_v46, %v1234_v17  ;;  %v1869_v36 = vpop.f32.mrb[23].mxu1  ;;  %v1942_v56 = vld [vmem:[%s2715_s5 + $0x10] sm:$0xff]  }
 0xe72   :  { %1871 = vmatpush3.bf16.msra.mxu0 %v1942_v56  ;;  %v1949_v56 = vld [vmem:[#allocation7 + $0x8] sm:$0xff]  }
 0xe73   :  { %v1292_v50 = vadd.f32 %v1288_v49, %v2552_v60  ;;  %v1293_v51 = vsel %vm262_vm2, %v1291_v48, 0.0  ;;  %v1301_v55 = vmul.f32 %v1291_v48, %v1291_v48  ;;  %v1943_v60 = vld [vmem:[%s2715_s5 + $0x18] sm:$0xff]   ;;  %1872 = vmatprep.subr.bf16.mxu0 %v2132_v0 }
 0xe74   :  { %1294 = vadd.xlane.f32.xlu0 %v1293_v51 }
 0xe75   :  { %v1296_v61 = vsel %vm262_vm2, %v1292_v50, 0.0  ;;  %v1302_v54 = vmul.f32 %v1292_v50, %v1292_v50  ;;  %v1303_v14 = vsel %vm262_vm2, %v1301_v55, 0.0 }
 0xe76   :  { %1297 = vadd.xlane.f32.xlu1 %v1296_v61  ;;  %1873 = vmatpush3.bf16.msra.mxu0 %v1943_v60 }
 0xe77   :  { %v1306_v57 = vsel %vm262_vm2, %v1302_v54, 0.0  ;;  %1890 = vmatprep.subr.bf16.mxu0 %v2132_v0 }
 0xe78   :  { %1304 = vadd.xlane.f32.xlu0 %v1303_v14 }
 0xe7a   :  { %1307 = vadd.xlane.f32.xlu1 %v1306_v57 }
 0xf01   :  { %v1295_v63 = vpop.xlane.xlu0 %1294 }
 0xf02   :  { %v1299_v1 = vmul.f32 0.03125, %v1295_v63 }
 0xf03   :  { %v1298_v10 = vpop.xlane.xlu1 %1297 }
 0xf04   :  { %v1300_v24 = vmul.f32 0.03125, %v1298_v10  ;;  %v1311_v4 = vmul.f32 %v1299_v1, %v1299_v1  ;;  %v1321_v43 = vsub.f32 %v1291_v48, %v1299_v1 }
 0xf05   :  { %v1305_v3 = vpop.xlane.xlu0 %1304 }
 0xf06   :  { %v1309_v12 = vmul.f32 0.03125, %v1305_v3  ;;  %v1312_v6 = vmul.f32 %v1300_v24, %v1300_v24  ;;  %v1322_v32 = vsub.f32 %v1292_v50, %v1300_v24 }
 0xf07   :  { %v1308_v5 = vpop.xlane.xlu1 %1307 }
 0xf08   :  { %v1313_v13 = vsub.f32 %v1309_v12, %v1311_v4  ;;  %v1310_v15 = vmul.f32 0.03125, %v1308_v5 }
 0xf0a   :  { %v1315_v19 = vmax.f32 %v1313_v13, 0.0  ;;  %v1314_v21 = vsub.f32 %v1310_v15, %v1312_v6 }
 0xf0c   :  { %v1317_v30 = vadd.f32 1e-05, %v1315_v19  ;;  %v1316_v33 = vmax.f32 %v1314_v21, 0.0 }
 0xf0e   :  { %1974 = vrsqrt.f32 %v1317_v30  ;;  %v1318_v20 = vadd.f32 1e-05, %v1316_v33 }
 0xf10   :  { %1976 = vrsqrt.f32 %v1318_v20 }
 0xf18   :  { %v1975_v31 = vpop.eup %1974 }
 0xf19   :  { %v1323_v52 = vmul.f32 %v1975_v31, %v1321_v43 }
 0xf1a   :  { %v1977_v53 = vpop.eup %1976 }
 0xf1b   :  { %v1324_v58 = vmul.f32 %v1977_v53, %v1322_v32  ;;  %v1329_v16 = vmul.f32 %v1328_v44, %v1323_v52 }
 0xf1d   :  { %v1330_v26 = vmul.f32 %v1328_v44, %v1324_v58  ;;  %v1335_v28 = vadd.f32 %v1334_v59, %v1329_v16 }
 0xf1f   :  { %v1336_v34 = vadd.f32 %v1334_v59, %v1330_v26 }
 0xf21   :  { %v1337_v37 = vpack.c.bf16 %v1336_v34, %v1335_v28 }
 0xf23   :  { %1875 = vmatmul.mubr.msk.bf16.vlgmr.msra.gmra.mrb[36].mxu0 %vm262_vm2, %v1337_v37 }
 0xf24   :  { %1894 = vmatprep.mubr.msk.bf16.mxu0 %vm2133_vm0, %v2132_v0  ;;  %1891 = vmatpush3.bf16.msra.mxu0 %v1948_v8 }
 0xf25   :  { %1892 = vmatprep.subr.bf16.mxu0 %v2132_v0  ;;  %v1650_v0 = vld [vmem:[%s2717_s7 + $0x18] sm:$0xff] }
 0xf26   :  { %v1510_v33 = vrot.slane %v1650_v0, %v2346_v25  ;;  %v1516_v53 = vrot.slane %v1650_v0, %v2338_v23 }
 0xf28   :  { %1893 = vmatpush3.bf16.msra.mxu0 %v1949_v56 }
 0xff6   :  { %v1391_v35 = vpop.f32.mrb[36].mxu0 }
 0xff7   :  { %v1392_v11 = vadd.f32 %v1391_v35, %v1341_v27  ;;  %v1876_v39 = vpop.f32.mrb[37].mxu0 }
 0xff8   :  { %v1394_v40 = vpop.f32.mrb[38].mxu0 }
 0xff9   :  { %v1395_v41 = vadd.f32 %v1394_v40, %v1341_v27  ;;  %v1877_v42 = vpop.f32.mrb[39].mxu0  ;;  %v1398_v17 = vmax.f32 %v1392_v11, 0.0 }
 0xffb   :  { %v1399_v18 = vmax.f32 %v1395_v41, 0.0 }
 0xffd   :  { %v1400_v29 = vpack.c.bf16 %v1399_v18, %v1398_v17 }
 0xfff   :  { %1887 = vmatmul.mubr.msk.bf16.vlgmr.msra.gmra.mrb[24].mxu1 %vm449_vm3, %v1400_v29 }
0x10d2   :  { %v1466_v46 = vpop.f32.mrb[24].mxu1 }
0x10d3   :  { %v1467_v48 = vadd.f32 %v1466_v46, %v1404_v45  ;;  %v1888_v49 = vpop.f32.mrb[25].mxu1 }
0x10d4   :  { %v1469_v36 = vpop.f32.mrb[26].mxu1 }
0x10d5   :  { %v1473_v38 = vadd.f32 %v1467_v48, %v1335_v28  ;;  %v1470_v50 = vadd.f32 %v1469_v36, %v1404_v45  ;;  %v1889_v51 = vpop.f32.mrb[27].mxu1  ;;  %v1673_v28 = vld [vmem:[%s2719_s9] ss:$0 sm:$0xff] }
0x10d7   :  { %v1474_v55 = vadd.f32 %v1470_v50, %v1336_v34  ;;  %v1475_v61 = vsel %vm262_vm2, %v1473_v38, 0.0  ;;  %v1483_v54 = vmul.f32 %v1473_v38, %v1473_v38 }
0x10d8   :  { %1476 = vadd.xlane.f32.xlu0 %v1475_v61 }
0x10d9   :  { %v1478_v14 = vsel %vm262_vm2, %v1474_v55, 0.0  ;;  %v1484_v57 = vmul.f32 %v1474_v55, %v1474_v55  ;;  %v1485_v22 = vsel %vm262_vm2, %v1483_v54, 0.0 }
0x10da   :  { %1479 = vadd.xlane.f32.xlu1 %v1478_v14 }
0x10db   :  { %v1488_v47 = vsel %vm262_vm2, %v1484_v57, 0.0 }
0x10dc   :  { %1486 = vadd.xlane.f32.xlu0 %v1485_v22 }
0x10de   :  { %1489 = vadd.xlane.f32.xlu1 %v1488_v47 }
0x1165   :  { %v1477_v60 = vpop.xlane.xlu0 %1476 }
0x1166   :  { %v1481_v62 = vmul.f32 0.03125, %v1477_v60 }
0x1167   :  { %v1480_v9 = vpop.xlane.xlu1 %1479 }
0x1168   :  { %v1482_v63 = vmul.f32 0.03125, %v1480_v9  ;;  %v1493_v10 = vmul.f32 %v1481_v62, %v1481_v62  ;;  %v1503_v30 = vsub.f32 %v1473_v38, %v1481_v62 }
0x1169   :  { %v1487_v1 = vpop.xlane.xlu0 %1486 }
0x116a   :  { %v1491_v24 = vmul.f32 0.03125, %v1487_v1  ;;  %v1494_v4 = vmul.f32 %v1482_v63, %v1482_v63  ;;  %v1504_v43 = vsub.f32 %v1474_v55, %v1482_v63 }
0x116b   :  { %v1490_v3 = vpop.xlane.xlu1 %1489 }
0x116c   :  { %v1495_v12 = vsub.f32 %v1491_v24, %v1493_v10  ;;  %v1492_v5 = vmul.f32 0.03125, %v1490_v3 }
0x116e   :  { %v1497_v6 = vmax.f32 %v1495_v12, 0.0  ;;  %v1496_v13 = vsub.f32 %v1492_v5, %v1494_v4 }
0x1170   :  { %v1499_v15 = vadd.f32 1e-05, %v1497_v6  ;;  %v1498_v19 = vmax.f32 %v1496_v13, 0.0 }
0x1172   :  { %1978 = vrsqrt.f32 %v1499_v15  ;;  %v1500_v21 = vadd.f32 1e-05, %v1498_v19 }
0x1174   :  { %1980 = vrsqrt.f32 %v1500_v21 }
0x117c   :  { %v1979_v20 = vpop.eup %1978 }
0x117d   :  { %v1505_v44 = vmul.f32 %v1979_v20, %v1503_v30 }
0x117e   :  { %v1981_v31 = vpop.eup %1980 }
0x117f   :  { %v1506_v32 = vmul.f32 %v1981_v31, %v1504_v43  ;;  %v1511_v52 = vmul.f32 %v1510_v33, %v1505_v44 }
0x1181   :  { %v1512_v58 = vmul.f32 %v1510_v33, %v1506_v32  ;;  %v1517_v16 = vadd.f32 %v1516_v53, %v1511_v52 }
0x1183   :  { %v1518_v59 = vadd.f32 %v1516_v53, %v1512_v58 }
0x1185   :  { %v1519_v26 = vpack.c.bf16 %v1518_v59, %v1517_v16 }
0x1187   :  { %1895 = vmatmul.mubr.msk.bf16.vlgmr.msra.gmra.mrb[40].mxu0 %vm262_vm2, %v1519_v26 }
0x125a   :  { %v1580_v34 = vpop.f32.mrb[40].mxu0 }
0x125b   :  { %v1581_v25 = vadd.f32 %v1673_v28, %v1580_v34  ;;  %v1896_v37 = vpop.f32.mrb[41].mxu0 }
0x125c   :  { %v1583_v2 = vpop.f32.mrb[42].mxu0 }
0x125d   :  { %1587 = vst [vmem:[%s2723_s13] sm:$0xff] %v1581_v25  ;;  %v1584_v7 = vadd.f32 %v1673_v28, %v1583_v2  ;;  %v1897_v23 = vpop.f32.mrb[43].mxu0 }
0x125f   :  { %1588 = vst [vmem:[%s2723_s13 + $0x8] sm:$0xff] %v1584_v7 }
0x1260   :  { %1593 = vsyncpa [#allocation3], 1 }
0x1261   :  { %1594 = vsyncpa [#allocation5], 1 }
0x1262   :  { %1595 = vsyncpa [#allocation8], 1 }
0x1263   :  { %1596 = vsyncpa [#allocation11], 1 }

</bundles_post_ra>
